<compile_context>
chip_gen: v7x
topology: tpu7x:2x2x1
jax: 0.10.0
libtpu: 0.0.40
codegen_flags: <defaults>
</compile_context>

<pallas_src>
import functools

import jax
import jax.numpy as jnp
from jax.experimental import pallas as pl
from jax.experimental.pallas import tpu as pltpu

EPS = 1e-5          # nn.BatchNorm1d default eps
NUM_PASSES = 4      # 3 stats passes (input, h1, h2) + 1 output pass


def _leaky_relu(h, slope):
    # slope is a static Python float (baked via functools.partial).
    if 0.0 <= slope <= 1.0:
        return jnp.maximum(h, h * slope)      # single VPU op
    return jnp.where(h >= 0, h, slope * h)


def _accumulate_stats(acc_ref, x):
    # acc_ref: (2, F) scratch; row 0 = sum(x), row 1 = sum(x*x). Single pass.
    acc_ref[0:1, :] += jnp.sum(x, axis=0, keepdims=True)
    acc_ref[1:2, :] += jnp.sum(x * x, axis=0, keepdims=True)


def _bn_affine(acc_ref, gamma, beta, count):
    # Training-mode BN as a per-feature affine y = x*s + t, using the global
    # batch stats (biased variance) held in the single-pass accumulator.
    inv_n = 1.0 / count
    mean = acc_ref[0:1, :] * inv_n
    var = acc_ref[1:2, :] * inv_n - mean * mean
    s = jax.lax.rsqrt(var + EPS) * gamma        # (1, F)
    t = beta - mean * s                         # (1, F)
    return s, t


def edge_mlp_kernel(
    # tiled data inputs
    src_ref, dst_ref, edge_ref,
    # BN1 params, pre-split to match src / dst / edge feature blocks
    g0a_ref, g0b_ref, g0c_ref, be0a_ref, be0b_ref, be0c_ref,
    # Linear1 weight split row-wise + bias
    w1a_ref, w1b_ref, w1c_ref, b1_ref,
    # BN2 / Linear2
    g1_ref, be1_ref, w2_ref, b2_ref,
    # BN3 / Linear3
    g2_ref, be2_ref, w3_ref, b3_ref,
    # output
    o_ref,
    # scratch: per-feature [sum; sumsq] accumulators (persist across grid)
    acc_src, acc_dst, acc_edge, acc_h1, acc_h2,
    # scratch: per-pass folded BN scales + folded Linear biases
    s0a_sc, s0b_sc, s0c_sc, b1f_sc, s1_sc, b2f_sc, s2_sc, b3f_sc,
    *, leakiness, num_edges):
    p = pl.program_id(0)   # pass index (sequential dependency chain)
    i = pl.program_id(1)   # edge-tile index

    @pl.when((p == 0) & (i == 0))
    def _init():
        for acc in (acc_src, acc_dst, acc_edge, acc_h1, acc_h2):
            acc[...] = jnp.zeros_like(acc)

    src = src_ref[...]
    dst = dst_ref[...]
    edge = edge_ref[...]

    @pl.when(p == 0)
    def _input_stats():
        _accumulate_stats(acc_src, src)
        _accumulate_stats(acc_dst, dst)
        _accumulate_stats(acc_edge, edge)

    # --- fold BN stats + Linear biases ONCE per pass (at tile 0) -----------
    @pl.when((p >= 1) & (i == 0))
    def _fold_params():
        n = float(num_edges)
        sa, ta = _bn_affine(acc_src, g0a_ref[...], be0a_ref[...], n)
        sb, tb = _bn_affine(acc_dst, g0b_ref[...], be0b_ref[...], n)
        sc, tc = _bn_affine(acc_edge, g0c_ref[...], be0c_ref[...], n)
        s0a_sc[...] = sa
        s0b_sc[...] = sb
        s0c_sc[...] = sc
        # Fold the BN shift into the Linear bias: tiny (1,F)@(F,N) matmuls.
        b1f_sc[...] = (
            jnp.dot(ta, w1a_ref[...], preferred_element_type=jnp.float32)
            + jnp.dot(tb, w1b_ref[...], preferred_element_type=jnp.float32)
            + jnp.dot(tc, w1c_ref[...], preferred_element_type=jnp.float32)
            + b1_ref[...])

        @pl.when(p >= 2)
        def _fold_layer2():
            s1, t1 = _bn_affine(acc_h1, g1_ref[...], be1_ref[...], n)
            s1_sc[...] = s1
            b2f_sc[...] = (
                jnp.dot(t1, w2_ref[...], preferred_element_type=jnp.float32)
                + b2_ref[...])

            @pl.when(p == NUM_PASSES - 1)
            def _fold_layer3():
                s2, t2 = _bn_affine(acc_h2, g2_ref[...], be2_ref[...], n)
                s2_sc[...] = s2
                b3f_sc[...] = (
                    jnp.dot(t2, w3_ref[...],
                            preferred_element_type=jnp.float32)
                    + b3_ref[...])

    # --- per-tile compute ----------------------------------------------------
    @pl.when(p >= 1)
    def _layer1_onward():
        # Fused concat: three row-blocks of W1, three accumulated dots.
        h1 = (jnp.dot(src * s0a_sc[...], w1a_ref[...],
                      preferred_element_type=jnp.float32)
              + jnp.dot(dst * s0b_sc[...], w1b_ref[...],
                        preferred_element_type=jnp.float32)
              + jnp.dot(edge * s0c_sc[...], w1c_ref[...],
                        preferred_element_type=jnp.float32)
              + b1f_sc[...])
        h1 = _leaky_relu(h1, leakiness)

        @pl.when(p == 1)
        def _h1_stats():
            _accumulate_stats(acc_h1, h1)

        @pl.when(p >= 2)
        def _layer2_onward():
            h2 = _leaky_relu(
                jnp.dot(h1 * s1_sc[...], w2_ref[...],
                        preferred_element_type=jnp.float32) + b2f_sc[...],
                leakiness)

            @pl.when(p == 2)
            def _h2_stats():
                _accumulate_stats(acc_h2, h2)

            @pl.when(p == NUM_PASSES - 1)
            def _final():
                o_ref[...] = (
                    jnp.dot(h2 * s2_sc[...], w3_ref[...],
                            preferred_element_type=jnp.float32)
                    + b3f_sc[...]).astype(o_ref.dtype)


def _pick_edge_tile(num_edges, target):
    """Largest multiple-of-8 edge-tile <= target that evenly divides num_edges."""
    if num_edges <= target:
        return num_edges
    t = min(target, num_edges)
    t -= t % 8
    for cand in range(t, 7, -8):
        if num_edges % cand == 0:
            return cand
    return num_edges   # fall back to a single (whole) block


def init_edge_model_params(key, node_in, edge_in, edge_out):
    """Deterministic parameter init mirroring the PyTorch module's shapes."""
    f_in = 2 * node_in + edge_in
    ks = jax.random.split(key, 9)

    def linear(kw, kb, fan_in, fan_out):
        bound = 1.0 / jnp.sqrt(fan_in)
        w = jax.random.uniform(kw, (fan_out, fan_in), jnp.float32, -bound, bound)
        b = jax.random.uniform(kb, (fan_out,), jnp.float32, -bound, bound)
        return w, b

    def bn(kg, kb, feat):
        gamma = 1.0 + 0.1 * jax.random.normal(kg, (feat,), jnp.float32)
        beta = 0.1 * jax.random.normal(kb, (feat,), jnp.float32)
        return gamma, beta

    g0, be0 = bn(ks[0], ks[1], f_in)
    w1, b1 = linear(ks[2], ks[3], f_in, edge_out)
    g1, be1 = bn(ks[4], ks[5], edge_out)
    w2, b2 = linear(ks[6], ks[7], edge_out, edge_out)
    g2, be2 = bn(ks[8], ks[1], edge_out)   # deterministic key reuse
    w3, b3 = linear(ks[0], ks[4], edge_out, edge_out)
    return dict(g0=g0, be0=be0, w1=w1, b1=b1,
                g1=g1, be1=be1, w2=w2, b2=b2,
                g2=g2, be2=be2, w3=w3, b3=b3)


def edge_model_forward(src, dst, edge_attr, params, leakiness=0.0,
                       block_edges=4096):
    E, node_in = src.shape
    edge_in = edge_attr.shape[1]
    edge_out = params["w1"].shape[0]
    f_in = 2 * node_in + edge_in
    f32 = jnp.float32

    def row(v):   # 1-D per-feature param -> (1, F) for lane broadcasting
        return jnp.asarray(v).reshape(1, -1).astype(f32)

    # Host-side layout glue (no big tensors): pre-transpose Linear weights to
    # (in, out) and pre-split W1 / BN1 params into src / dst / edge blocks.
    w1 = params["w1"].T.astype(f32)                       # (f_in, edge_out)
    w1a = w1[:node_in]
    w1b = w1[node_in:2 * node_in]
    w1c = w1[2 * node_in:]
    g0 = params["g0"].astype(f32)
    be0 = params["be0"].astype(f32)
    g0a, g0b, g0c = g0[:node_in], g0[node_in:2 * node_in], g0[2 * node_in:]
    be0a, be0b, be0c = be0[:node_in], be0[node_in:2 * node_in], be0[2 * node_in:]

    te = _pick_edge_tile(E, block_edges)
    nt = E // te

    args = (
        src.astype(f32), dst.astype(f32), edge_attr.astype(f32),
        row(g0a), row(g0b), row(g0c), row(be0a), row(be0b), row(be0c),
        w1a, w1b, w1c, row(params["b1"]),
        row(params["g1"]), row(params["be1"]),
        params["w2"].T.astype(f32), row(params["b2"]),
        row(params["g2"]), row(params["be2"]),
        params["w3"].T.astype(f32), row(params["b3"]),
    )

    def data_spec(feat):
        return pl.BlockSpec((te, feat), lambda p, i: (i, 0))

    def full_spec(shape):
        return pl.BlockSpec(shape, lambda p, i: (0, 0))

    in_specs = ([data_spec(node_in), data_spec(node_in), data_spec(edge_in)]
                + [full_spec(a.shape) for a in args[3:]])

    # Output block only advances on the final pass -> no garbage / redundant
    # writebacks from the three stats passes.
    out_spec = pl.BlockSpec(
        (te, edge_out),
        lambda p, i: (jnp.where(p == NUM_PASSES - 1, i, 0), 0))

    kernel = functools.partial(edge_mlp_kernel,
                               leakiness=leakiness, num_edges=E)

    # Rough cost hint for the XLA scheduler around the custom call.
    flops = 2 * E * (3 * f_in * edge_out + 3 * edge_out * edge_out)
    bytes_accessed = (NUM_PASSES * 4 * E * f_in          # input re-reads
                      + 4 * E * edge_out                 # output write
                      + 4 * (f_in * edge_out + 2 * edge_out * edge_out))
    cost = pl.CostEstimate(flops=int(flops), transcendentals=0,
                           bytes_accessed=int(bytes_accessed))

    return pl.pallas_call(
        kernel,
        out_shape=jax.ShapeDtypeStruct((E, edge_out), f32),
        grid_spec=pltpu.PrefetchScalarGridSpec(
            num_scalar_prefetch=0,
            grid=(NUM_PASSES, nt),
            in_specs=in_specs,
            out_specs=out_spec,
            scratch_shapes=[
                # per-feature [sum; sumsq] accumulators
                pltpu.VMEM((2, node_in), f32),    # acc_src
                pltpu.VMEM((2, node_in), f32),    # acc_dst
                pltpu.VMEM((2, edge_in), f32),    # acc_edge
                pltpu.VMEM((2, edge_out), f32),   # acc_h1
                pltpu.VMEM((2, edge_out), f32),   # acc_h2
                # per-pass folded BN scales / folded biases
                pltpu.VMEM((1, node_in), f32),    # s0a
                pltpu.VMEM((1, node_in), f32),    # s0b
                pltpu.VMEM((1, edge_in), f32),    # s0c
                pltpu.VMEM((1, edge_out), f32),   # b1 folded
                pltpu.VMEM((1, edge_out), f32),   # s1
                pltpu.VMEM((1, edge_out), f32),   # b2 folded
                pltpu.VMEM((1, edge_out), f32),   # s2
                pltpu.VMEM((1, edge_out), f32),   # b3 folded
            ]),
        compiler_params=pltpu.CompilerParams(
            # Both axes sequential: pass axis is a dependency chain, and the
            # edge-tile axis feeds global-BN accumulators in per-core scratch.
            dimension_semantics=("arbitrary", "arbitrary"),
            # Explicit limit: safe on v7x (64 MiB VMEM) as well as v5e/v6e.
            vmem_limit_bytes=32 * 1024 * 1024),
        cost_estimate=cost,
    )(*args)


def edge_model_reference(src, dst, edge_attr, params, leakiness=0.0):
    """Pure-JAX reference (two-pass BN stats) for correctness checking."""
    x = jnp.concatenate([src, dst, edge_attr], axis=1).astype(jnp.float32)

    def bn(h, gamma, beta):
        mean = jnp.mean(h, axis=0, keepdims=True)
        var = jnp.mean((h - mean) ** 2, axis=0, keepdims=True)
        return (h - mean) * jax.lax.rsqrt(var + EPS) * gamma + beta

    h = bn(x, params["g0"][None, :], params["be0"][None, :])
    h = h @ params["w1"].T + params["b1"][None, :]
    h = jnp.where(h >= 0, h, leakiness * h)
    h = bn(h, params["g1"][None, :], params["be1"][None, :])
    h = h @ params["w2"].T + params["b2"][None, :]
    h = jnp.where(h >= 0, h, leakiness * h)
    h = bn(h, params["g2"][None, :], params["be2"][None, :])
    h = h @ params["w3"].T + params["b3"][None, :]
    return h


if __name__ == "__main__":
    node_in, edge_in, edge_out = 16, 16, 32
    leakiness = 0.1
    num_edges = 512          # small demo; tiled into 4 edge blocks of 128

    key = jax.random.PRNGKey(0)
    k_src, k_dst, k_edge, k_par = jax.random.split(key, 4)
    src = jax.random.normal(k_src, (num_edges, node_in), jnp.float32)
    dst = jax.random.normal(k_dst, (num_edges, node_in), jnp.float32)
    edge_attr = jax.random.normal(k_edge, (num_edges, edge_in), jnp.float32)

    params = init_edge_model_params(k_par, node_in, edge_in, edge_out)

    out = edge_model_forward(src, dst, edge_attr, params,
                             leakiness=leakiness, block_edges=128)
    out = jax.block_until_ready(out)

    ref = edge_model_reference(src, dst, edge_attr, params,
                               leakiness=leakiness)
    assert out.shape == (num_edges, edge_out)
    assert bool(jnp.all(jnp.isfinite(out)))
    max_err = float(jnp.max(jnp.abs(out - ref)))
    assert jnp.allclose(out, ref, atol=1e-3, rtol=1e-3), max_err

    print("KERNEL_OK")
</pallas_src>

<mosaic_0001>
module attributes {stable_mosaic.version = 11 : i64} {
  func.func @edge_mlp_kernel(%arg0: i32, %arg1: i32, %arg2: memref<128x16xf32, #tpu.memory_space<vmem>>, %arg3: memref<128x16xf32, #tpu.memory_space<vmem>>, %arg4: memref<128x16xf32, #tpu.memory_space<vmem>>, %arg5: memref<1x16xf32, #tpu.memory_space<vmem>>, %arg6: memref<1x16xf32, #tpu.memory_space<vmem>>, %arg7: memref<1x16xf32, #tpu.memory_space<vmem>>, %arg8: memref<1x16xf32, #tpu.memory_space<vmem>>, %arg9: memref<1x16xf32, #tpu.memory_space<vmem>>, %arg10: memref<1x16xf32, #tpu.memory_space<vmem>>, %arg11: memref<16x32xf32, #tpu.memory_space<vmem>>, %arg12: memref<16x32xf32, #tpu.memory_space<vmem>>, %arg13: memref<16x32xf32, #tpu.memory_space<vmem>>, %arg14: memref<1x32xf32, #tpu.memory_space<vmem>>, %arg15: memref<1x32xf32, #tpu.memory_space<vmem>>, %arg16: memref<1x32xf32, #tpu.memory_space<vmem>>, %arg17: memref<32x32xf32, #tpu.memory_space<vmem>>, %arg18: memref<1x32xf32, #tpu.memory_space<vmem>>, %arg19: memref<1x32xf32, #tpu.memory_space<vmem>>, %arg20: memref<1x32xf32, #tpu.memory_space<vmem>>, %arg21: memref<32x32xf32, #tpu.memory_space<vmem>>, %arg22: memref<1x32xf32, #tpu.memory_space<vmem>>, %arg23: memref<128x32xf32, #tpu.memory_space<vmem>>, %arg24: memref<2x16xf32, #tpu.memory_space<vmem>>, %arg25: memref<2x16xf32, #tpu.memory_space<vmem>>, %arg26: memref<2x16xf32, #tpu.memory_space<vmem>>, %arg27: memref<2x32xf32, #tpu.memory_space<vmem>>, %arg28: memref<2x32xf32, #tpu.memory_space<vmem>>, %arg29: memref<1x16xf32, #tpu.memory_space<vmem>>, %arg30: memref<1x16xf32, #tpu.memory_space<vmem>>, %arg31: memref<1x16xf32, #tpu.memory_space<vmem>>, %arg32: memref<1x32xf32, #tpu.memory_space<vmem>>, %arg33: memref<1x32xf32, #tpu.memory_space<vmem>>, %arg34: memref<1x32xf32, #tpu.memory_space<vmem>>, %arg35: memref<1x32xf32, #tpu.memory_space<vmem>>, %arg36: memref<1x32xf32, #tpu.memory_space<vmem>>) attributes {dimension_semantics = [#tpu.dimension_semantics<arbitrary>, #tpu.dimension_semantics<arbitrary>], iteration_bounds = array<i64: 4, 4>, scalar_prefetch = 0 : i64, scratch_operands = 13 : i64, tpu.core_type = #tpu.core_type<tc>, window_params = [{transform_indices = @transform_0, window_bounds = array<i64: 128, 16>}, {transform_indices = @transform_1, window_bounds = array<i64: 128, 16>}, {transform_indices = @transform_2, window_bounds = array<i64: 128, 16>}, {pipeline_mode = #tpu.pipeline_mode<synchronous>, transform_indices = @transform_3, window_bounds = array<i64: 1, 16>}, {pipeline_mode = #tpu.pipeline_mode<synchronous>, transform_indices = @transform_4, window_bounds = array<i64: 1, 16>}, {pipeline_mode = #tpu.pipeline_mode<synchronous>, transform_indices = @transform_5, window_bounds = array<i64: 1, 16>}, {pipeline_mode = #tpu.pipeline_mode<synchronous>, transform_indices = @transform_6, window_bounds = array<i64: 1, 16>}, {pipeline_mode = #tpu.pipeline_mode<synchronous>, transform_indices = @transform_7, window_bounds = array<i64: 1, 16>}, {pipeline_mode = #tpu.pipeline_mode<synchronous>, transform_indices = @transform_8, window_bounds = array<i64: 1, 16>}, {pipeline_mode = #tpu.pipeline_mode<synchronous>, transform_indices = @transform_9, window_bounds = array<i64: 16, 32>}, {pipeline_mode = #tpu.pipeline_mode<synchronous>, transform_indices = @transform_10, window_bounds = array<i64: 16, 32>}, {pipeline_mode = #tpu.pipeline_mode<synchronous>, transform_indices = @transform_11, window_bounds = array<i64: 16, 32>}, {pipeline_mode = #tpu.pipeline_mode<synchronous>, transform_indices = @transform_12, window_bounds = array<i64: 1, 32>}, {pipeline_mode = #tpu.pipeline_mode<synchronous>, transform_indices = @transform_13, window_bounds = array<i64: 1, 32>}, {pipeline_mode = #tpu.pipeline_mode<synchronous>, transform_indices = @transform_14, window_bounds = array<i64: 1, 32>}, {pipeline_mode = #tpu.pipeline_mode<synchronous>, transform_indices = @transform_15, window_bounds = array<i64: 32, 32>}, {pipeline_mode = #tpu.pipeline_mode<synchronous>, transform_indices = @transform_16, window_bounds = array<i64: 1, 32>}, {pipeline_mode = #tpu.pipeline_mode<synchronous>, transform_indices = @transform_17, window_bounds = array<i64: 1, 32>}, {pipeline_mode = #tpu.pipeline_mode<synchronous>, transform_indices = @transform_18, window_bounds = array<i64: 1, 32>}, {pipeline_mode = #tpu.pipeline_mode<synchronous>, transform_indices = @transform_19, window_bounds = array<i64: 32, 32>}, {pipeline_mode = #tpu.pipeline_mode<synchronous>, transform_indices = @transform_20, window_bounds = array<i64: 1, 32>}, {transform_indices = @transform_21, window_bounds = array<i64: 128, 32>}]} {
    %c0_i32 = arith.constant 0 : i32
    %0 = arith.cmpi eq, %arg0, %c0_i32 : i32
    %c0_i32_0 = arith.constant 0 : i32
    %1 = arith.cmpi eq, %arg1, %c0_i32_0 : i32
    %2 = arith.andi %0, %1 : i1
    %3 = arith.extui %2 : i1 to i32
    %c0_i32_1 = arith.constant 0 : i32
    %4 = arith.cmpi ne, %3, %c0_i32_1 : i32
    scf.if %4 {
      %cst = arith.constant 0.000000e+00 : f32
      %19 = vector.broadcast %cst : f32 to vector<2x16xf32>
      %c0_13 = arith.constant 0 : index
      %c0_14 = arith.constant 0 : index
      %20 = vector.load %arg24[%c0_13, %c0_14] : memref<2x16xf32, #tpu.memory_space<vmem>>, vector<2x16xf32>
      tpu.vector_store %arg24[%c0_13, %c0_14], %19 {strides = array<i32>} : memref<2x16xf32, #tpu.memory_space<vmem>>, vector<2x16xf32>,
      %cst_15 = arith.constant 0.000000e+00 : f32
      %21 = vector.broadcast %cst_15 : f32 to vector<2x16xf32>
      %c0_16 = arith.constant 0 : index
      %c0_17 = arith.constant 0 : index
      %22 = vector.load %arg25[%c0_16, %c0_17] : memref<2x16xf32, #tpu.memory_space<vmem>>, vector<2x16xf32>
      tpu.vector_store %arg25[%c0_16, %c0_17], %21 {strides = array<i32>} : memref<2x16xf32, #tpu.memory_space<vmem>>, vector<2x16xf32>,
      %cst_18 = arith.constant 0.000000e+00 : f32
      %23 = vector.broadcast %cst_18 : f32 to vector<2x16xf32>
      %c0_19 = arith.constant 0 : index
      %c0_20 = arith.constant 0 : index
      %24 = vector.load %arg26[%c0_19, %c0_20] : memref<2x16xf32, #tpu.memory_space<vmem>>, vector<2x16xf32>
      tpu.vector_store %arg26[%c0_19, %c0_20], %23 {strides = array<i32>} : memref<2x16xf32, #tpu.memory_space<vmem>>, vector<2x16xf32>,
      %cst_21 = arith.constant 0.000000e+00 : f32
      %25 = vector.broadcast %cst_21 : f32 to vector<2x32xf32>
      %c0_22 = arith.constant 0 : index
      %c0_23 = arith.constant 0 : index
      %26 = vector.load %arg27[%c0_22, %c0_23] : memref<2x32xf32, #tpu.memory_space<vmem>>, vector<2x32xf32>
      tpu.vector_store %arg27[%c0_22, %c0_23], %25 {strides = array<i32>} : memref<2x32xf32, #tpu.memory_space<vmem>>, vector<2x32xf32>,
      %cst_24 = arith.constant 0.000000e+00 : f32
      %27 = vector.broadcast %cst_24 : f32 to vector<2x32xf32>
      %c0_25 = arith.constant 0 : index
      %c0_26 = arith.constant 0 : index
      %28 = vector.load %arg28[%c0_25, %c0_26] : memref<2x32xf32, #tpu.memory_space<vmem>>, vector<2x32xf32>
      tpu.vector_store %arg28[%c0_25, %c0_26], %27 {strides = array<i32>} : memref<2x32xf32, #tpu.memory_space<vmem>>, vector<2x32xf32>,
    } else {
    }
    %c0 = arith.constant 0 : index
    %c0_2 = arith.constant 0 : index
    %5 = vector.load %arg2[%c0, %c0_2] : memref<128x16xf32, #tpu.memory_space<vmem>>, vector<128x16xf32>
    %c0_3 = arith.constant 0 : index
    %c0_4 = arith.constant 0 : index
    %6 = vector.load %arg3[%c0_3, %c0_4] : memref<128x16xf32, #tpu.memory_space<vmem>>, vector<128x16xf32>
    %c0_5 = arith.constant 0 : index
    %c0_6 = arith.constant 0 : index
    %7 = vector.load %arg4[%c0_5, %c0_6] : memref<128x16xf32, #tpu.memory_space<vmem>>, vector<128x16xf32>
    %c0_i32_7 = arith.constant 0 : i32
    %8 = arith.cmpi eq, %arg0, %c0_i32_7 : i32
    %9 = arith.extui %8 : i1 to i32
    %c0_i32_8 = arith.constant 0 : i32
    %10 = arith.cmpi ne, %9, %c0_i32_8 : i32
    scf.if %10 {
      %c0_13 = arith.constant 0 : index
      %c0_14 = arith.constant 0 : index
      %19 = vector.load %arg24[%c0_13, %c0_14] : memref<2x16xf32, #tpu.memory_space<vmem>>, vector<1x16xf32>
      %cst = arith.constant dense<0.000000e+00> : vector<16xf32>
      %20 = vector.multi_reduction <add>, %5, %cst [0] : vector<128x16xf32> to vector<16xf32>
      %21 = vector.shape_cast %20 : vector<16xf32> to vector<1x16xf32>
      %22 = arith.addf %19, %21 : vector<1x16xf32>
      %c0_15 = arith.constant 0 : index
      %c0_16 = arith.constant 0 : index
      %23 = vector.load %arg24[%c0_15, %c0_16] : memref<2x16xf32, #tpu.memory_space<vmem>>, vector<1x16xf32>
      tpu.vector_store %arg24[%c0_15, %c0_16], %22 {strides = array<i32>} : memref<2x16xf32, #tpu.memory_space<vmem>>, vector<1x16xf32>,
      %c1 = arith.constant 1 : index
      %c0_17 = arith.constant 0 : index
      %24 = vector.load %arg24[%c1, %c0_17] : memref<2x16xf32, #tpu.memory_space<vmem>>, vector<1x16xf32>
      %25 = arith.mulf %5, %5 : vector<128x16xf32>
      %cst_18 = arith.constant dense<0.000000e+00> : vector<16xf32>
      %26 = vector.multi_reduction <add>, %25, %cst_18 [0] : vector<128x16xf32> to vector<16xf32>
      %27 = vector.shape_cast %26 : vector<16xf32> to vector<1x16xf32>
      %28 = arith.addf %24, %27 : vector<1x16xf32>
      %c1_19 = arith.constant 1 : index
      %c0_20 = arith.constant 0 : index
      %29 = vector.load %arg24[%c1_19, %c0_20] : memref<2x16xf32, #tpu.memory_space<vmem>>, vector<1x16xf32>
      tpu.vector_store %arg24[%c1_19, %c0_20], %28 {strides = array<i32>} : memref<2x16xf32, #tpu.memory_space<vmem>>, vector<1x16xf32>,
      %c0_21 = arith.constant 0 : index
      %c0_22 = arith.constant 0 : index
      %30 = vector.load %arg25[%c0_21, %c0_22] : memref<2x16xf32, #tpu.memory_space<vmem>>, vector<1x16xf32>
      %cst_23 = arith.constant dense<0.000000e+00> : vector<16xf32>
      %31 = vector.multi_reduction <add>, %6, %cst_23 [0] : vector<128x16xf32> to vector<16xf32>
      %32 = vector.shape_cast %31 : vector<16xf32> to vector<1x16xf32>
      %33 = arith.addf %30, %32 : vector<1x16xf32>
      %c0_24 = arith.constant 0 : index
      %c0_25 = arith.constant 0 : index
      %34 = vector.load %arg25[%c0_24, %c0_25] : memref<2x16xf32, #tpu.memory_space<vmem>>, vector<1x16xf32>
      tpu.vector_store %arg25[%c0_24, %c0_25], %33 {strides = array<i32>} : memref<2x16xf32, #tpu.memory_space<vmem>>, vector<1x16xf32>,
      %c1_26 = arith.constant 1 : index
      %c0_27 = arith.constant 0 : index
      %35 = vector.load %arg25[%c1_26, %c0_27] : memref<2x16xf32, #tpu.memory_space<vmem>>, vector<1x16xf32>
      %36 = arith.mulf %6, %6 : vector<128x16xf32>
      %cst_28 = arith.constant dense<0.000000e+00> : vector<16xf32>
      %37 = vector.multi_reduction <add>, %36, %cst_28 [0] : vector<128x16xf32> to vector<16xf32>
      %38 = vector.shape_cast %37 : vector<16xf32> to vector<1x16xf32>
      %39 = arith.addf %35, %38 : vector<1x16xf32>
      %c1_29 = arith.constant 1 : index
      %c0_30 = arith.constant 0 : index
      %40 = vector.load %arg25[%c1_29, %c0_30] : memref<2x16xf32, #tpu.memory_space<vmem>>, vector<1x16xf32>
      tpu.vector_store %arg25[%c1_29, %c0_30], %39 {strides = array<i32>} : memref<2x16xf32, #tpu.memory_space<vmem>>, vector<1x16xf32>,
      %c0_31 = arith.constant 0 : index
      %c0_32 = arith.constant 0 : index
      %41 = vector.load %arg26[%c0_31, %c0_32] : memref<2x16xf32, #tpu.memory_space<vmem>>, vector<1x16xf32>
      %cst_33 = arith.constant dense<0.000000e+00> : vector<16xf32>
      %42 = vector.multi_reduction <add>, %7, %cst_33 [0] : vector<128x16xf32> to vector<16xf32>
      %43 = vector.shape_cast %42 : vector<16xf32> to vector<1x16xf32>
      %44 = arith.addf %41, %43 : vector<1x16xf32>
      %c0_34 = arith.constant 0 : index
      %c0_35 = arith.constant 0 : index
      %45 = vector.load %arg26[%c0_34, %c0_35] : memref<2x16xf32, #tpu.memory_space<vmem>>, vector<1x16xf32>
      tpu.vector_store %arg26[%c0_34, %c0_35], %44 {strides = array<i32>} : memref<2x16xf32, #tpu.memory_space<vmem>>, vector<1x16xf32>,
      %c1_36 = arith.constant 1 : index
      %c0_37 = arith.constant 0 : index
      %46 = vector.load %arg26[%c1_36, %c0_37] : memref<2x16xf32, #tpu.memory_space<vmem>>, vector<1x16xf32>
      %47 = arith.mulf %7, %7 : vector<128x16xf32>
      %cst_38 = arith.constant dense<0.000000e+00> : vector<16xf32>
      %48 = vector.multi_reduction <add>, %47, %cst_38 [0] : vector<128x16xf32> to vector<16xf32>
      %49 = vector.shape_cast %48 : vector<16xf32> to vector<1x16xf32>
      %50 = arith.addf %46, %49 : vector<1x16xf32>
      %c1_39 = arith.constant 1 : index
      %c0_40 = arith.constant 0 : index
      %51 = vector.load %arg26[%c1_39, %c0_40] : memref<2x16xf32, #tpu.memory_space<vmem>>, vector<1x16xf32>
      tpu.vector_store %arg26[%c1_39, %c0_40], %50 {strides = array<i32>} : memref<2x16xf32, #tpu.memory_space<vmem>>, vector<1x16xf32>,
    } else {
    }
    %c1_i32 = arith.constant 1 : i32
    %11 = arith.cmpi sge, %arg0, %c1_i32 : i32
    %c0_i32_9 = arith.constant 0 : i32
    %12 = arith.cmpi eq, %arg1, %c0_i32_9 : i32
    %13 = arith.andi %11, %12 : i1
    %14 = arith.extui %13 : i1 to i32
    %c0_i32_10 = arith.constant 0 : i32
    %15 = arith.cmpi ne, %14, %c0_i32_10 : i32
    scf.if %15 {
      %c0_13 = arith.constant 0 : index
      %c0_14 = arith.constant 0 : index
      %19 = vector.load %arg5[%c0_13, %c0_14] : memref<1x16xf32, #tpu.memory_space<vmem>>, vector<1x16xf32>
      %c0_15 = arith.constant 0 : index
      %c0_16 = arith.constant 0 : index
      %20 = vector.load %arg8[%c0_15, %c0_16] : memref<1x16xf32, #tpu.memory_space<vmem>>, vector<1x16xf32>
      %c0_17 = arith.constant 0 : index
      %c0_18 = arith.constant 0 : index
      %21 = vector.load %arg24[%c0_17, %c0_18] : memref<2x16xf32, #tpu.memory_space<vmem>>, vector<1x16xf32>
      %cst = arith.constant 0.001953125 : f32
      %22 = vector.broadcast %cst : f32 to vector<1x16xf32>
      %23 = arith.mulf %21, %22 : vector<1x16xf32>
      %c1 = arith.constant 1 : index
      %c0_19 = arith.constant 0 : index
      %24 = vector.load %arg24[%c1, %c0_19] : memref<2x16xf32, #tpu.memory_space<vmem>>, vector<1x16xf32>
      %cst_20 = arith.constant 0.001953125 : f32
      %25 = vector.broadcast %cst_20 : f32 to vector<1x16xf32>
      %26 = arith.mulf %24, %25 : vector<1x16xf32>
      %27 = arith.mulf %23, %23 : vector<1x16xf32>
      %28 = arith.subf %26, %27 : vector<1x16xf32>
      %cst_21 = arith.constant 9.99999974E-6 : f32
      %29 = vector.broadcast %cst_21 : f32 to vector<1x16xf32>
      %30 = arith.addf %28, %29 : vector<1x16xf32>
      %31 = math.rsqrt %30 : vector<1x16xf32>
      %32 = arith.mulf %31, %19 : vector<1x16xf32>
      %33 = arith.mulf %23, %32 : vector<1x16xf32>
      %34 = arith.subf %20, %33 : vector<1x16xf32>
      %c0_22 = arith.constant 0 : index
      %c0_23 = arith.constant 0 : index
      %35 = vector.load %arg6[%c0_22, %c0_23] : memref<1x16xf32, #tpu.memory_space<vmem>>, vector<1x16xf32>
      %c0_24 = arith.constant 0 : index
      %c0_25 = arith.constant 0 : index
      %36 = vector.load %arg9[%c0_24, %c0_25] : memref<1x16xf32, #tpu.memory_space<vmem>>, vector<1x16xf32>
      %c0_26 = arith.constant 0 : index
      %c0_27 = arith.constant 0 : index
      %37 = vector.load %arg25[%c0_26, %c0_27] : memref<2x16xf32, #tpu.memory_space<vmem>>, vector<1x16xf32>
      %cst_28 = arith.constant 0.001953125 : f32
      %38 = vector.broadcast %cst_28 : f32 to vector<1x16xf32>
      %39 = arith.mulf %37, %38 : vector<1x16xf32>
      %c1_29 = arith.constant 1 : index
      %c0_30 = arith.constant 0 : index
      %40 = vector.load %arg25[%c1_29, %c0_30] : memref<2x16xf32, #tpu.memory_space<vmem>>, vector<1x16xf32>
      %cst_31 = arith.constant 0.001953125 : f32
      %41 = vector.broadcast %cst_31 : f32 to vector<1x16xf32>
      %42 = arith.mulf %40, %41 : vector<1x16xf32>
      %43 = arith.mulf %39, %39 : vector<1x16xf32>
      %44 = arith.subf %42, %43 : vector<1x16xf32>
      %cst_32 = arith.constant 9.99999974E-6 : f32
      %45 = vector.broadcast %cst_32 : f32 to vector<1x16xf32>
      %46 = arith.addf %44, %45 : vector<1x16xf32>
      %47 = math.rsqrt %46 : vector<1x16xf32>
      %48 = arith.mulf %47, %35 : vector<1x16xf32>
      %49 = arith.mulf %39, %48 : vector<1x16xf32>
      %50 = arith.subf %36, %49 : vector<1x16xf32>
      %c0_33 = arith.constant 0 : index
      %c0_34 = arith.constant 0 : index
      %51 = vector.load %arg7[%c0_33, %c0_34] : memref<1x16xf32, #tpu.memory_space<vmem>>, vector<1x16xf32>
      %c0_35 = arith.constant 0 : index
      %c0_36 = arith.constant 0 : index
      %52 = vector.load %arg10[%c0_35, %c0_36] : memref<1x16xf32, #tpu.memory_space<vmem>>, vector<1x16xf32>
      %c0_37 = arith.constant 0 : index
      %c0_38 = arith.constant 0 : index
      %53 = vector.load %arg26[%c0_37, %c0_38] : memref<2x16xf32, #tpu.memory_space<vmem>>, vector<1x16xf32>
      %cst_39 = arith.constant 0.001953125 : f32
      %54 = vector.broadcast %cst_39 : f32 to vector<1x16xf32>
      %55 = arith.mulf %53, %54 : vector<1x16xf32>
      %c1_40 = arith.constant 1 : index
      %c0_41 = arith.constant 0 : index
      %56 = vector.load %arg26[%c1_40, %c0_41] : memref<2x16xf32, #tpu.memory_space<vmem>>, vector<1x16xf32>
      %cst_42 = arith.constant 0.001953125 : f32
      %57 = vector.broadcast %cst_42 : f32 to vector<1x16xf32>
      %58 = arith.mulf %56, %57 : vector<1x16xf32>
      %59 = arith.mulf %55, %55 : vector<1x16xf32>
      %60 = arith.subf %58, %59 : vector<1x16xf32>
      %cst_43 = arith.constant 9.99999974E-6 : f32
      %61 = vector.broadcast %cst_43 : f32 to vector<1x16xf32>
      %62 = arith.addf %60, %61 : vector<1x16xf32>
      %63 = math.rsqrt %62 : vector<1x16xf32>
      %64 = arith.mulf %63, %51 : vector<1x16xf32>
      %65 = arith.mulf %55, %64 : vector<1x16xf32>
      %66 = arith.subf %52, %65 : vector<1x16xf32>
      %c0_44 = arith.constant 0 : index
      %c0_45 = arith.constant 0 : index
      %67 = vector.load %arg29[%c0_44, %c0_45] : memref<1x16xf32, #tpu.memory_space<vmem>>, vector<1x16xf32>
      tpu.vector_store %arg29[%c0_44, %c0_45], %32 {strides = array<i32>} : memref<1x16xf32, #tpu.memory_space<vmem>>, vector<1x16xf32>,
      %c0_46 = arith.constant 0 : index
      %c0_47 = arith.constant 0 : index
      %68 = vector.load %arg30[%c0_46, %c0_47] : memref<1x16xf32, #tpu.memory_space<vmem>>, vector<1x16xf32>
      tpu.vector_store %arg30[%c0_46, %c0_47], %48 {strides = array<i32>} : memref<1x16xf32, #tpu.memory_space<vmem>>, vector<1x16xf32>,
      %c0_48 = arith.constant 0 : index
      %c0_49 = arith.constant 0 : index
      %69 = vector.load %arg31[%c0_48, %c0_49] : memref<1x16xf32, #tpu.memory_space<vmem>>, vector<1x16xf32>
      tpu.vector_store %arg31[%c0_48, %c0_49], %64 {strides = array<i32>} : memref<1x16xf32, #tpu.memory_space<vmem>>, vector<1x16xf32>,
      %c0_50 = arith.constant 0 : index
      %c0_51 = arith.constant 0 : index
      %70 = vector.load %arg11[%c0_50, %c0_51] : memref<16x32xf32, #tpu.memory_space<vmem>>, vector<16x32xf32>
      %cst_52 = arith.constant dense<0.000000e+00> : vector<1x32xf32>
      %71 = tpu.matmul %34, %70, %cst_52 {dimension_numbers = #tpu.dot_dimension_numbers<[1], [0], [0], [1], [0, 0, 1, 1], [], []>} : vector<1x16xf32>, vector<16x32xf32>, vector<1x32xf32> -> vector<1x32xf32>
      %c0_53 = arith.constant 0 : index
      %c0_54 = arith.constant 0 : index
      %72 = vector.load %arg12[%c0_53, %c0_54] : memref<16x32xf32, #tpu.memory_space<vmem>>, vector<16x32xf32>
      %cst_55 = arith.constant dense<0.000000e+00> : vector<1x32xf32>
      %73 = tpu.matmul %50, %72, %cst_55 {dimension_numbers = #tpu.dot_dimension_numbers<[1], [0], [0], [1], [0, 0, 1, 1], [], []>} : vector<1x16xf32>, vector<16x32xf32>, vector<1x32xf32> -> vector<1x32xf32>
      %74 = arith.addf %71, %73 : vector<1x32xf32>
      %c0_56 = arith.constant 0 : index
      %c0_57 = arith.constant 0 : index
      %75 = vector.load %arg13[%c0_56, %c0_57] : memref<16x32xf32, #tpu.memory_space<vmem>>, vector<16x32xf32>
      %cst_58 = arith.constant dense<0.000000e+00> : vector<1x32xf32>
      %76 = tpu.matmul %66, %75, %cst_58 {dimension_numbers = #tpu.dot_dimension_numbers<[1], [0], [0], [1], [0, 0, 1, 1], [], []>} : vector<1x16xf32>, vector<16x32xf32>, vector<1x32xf32> -> vector<1x32xf32>
      %77 = arith.addf %74, %76 : vector<1x32xf32>
      %c0_59 = arith.constant 0 : index
      %c0_60 = arith.constant 0 : index
      %78 = vector.load %arg14[%c0_59, %c0_60] : memref<1x32xf32, #tpu.memory_space<vmem>>, vector<1x32xf32>
      %79 = arith.addf %77, %78 : vector<1x32xf32>
      %c0_61 = arith.constant 0 : index
      %c0_62 = arith.constant 0 : index
      %80 = vector.load %arg32[%c0_61, %c0_62] : memref<1x32xf32, #tpu.memory_space<vmem>>, vector<1x32xf32>
      tpu.vector_store %arg32[%c0_61, %c0_62], %79 {strides = array<i32>} : memref<1x32xf32, #tpu.memory_space<vmem>>, vector<1x32xf32>,
      %c2_i32 = arith.constant 2 : i32
      %81 = arith.cmpi sge, %arg0, %c2_i32 : i32
      %82 = arith.extui %81 : i1 to i32
      %c0_i32_63 = arith.constant 0 : i32
      %83 = arith.cmpi ne, %82, %c0_i32_63 : i32
      scf.if %83 {
        %c0_64 = arith.constant 0 : index
        %c0_65 = arith.constant 0 : index
        %84 = vector.load %arg15[%c0_64, %c0_65] : memref<1x32xf32, #tpu.memory_space<vmem>>, vector<1x32xf32>
        %c0_66 = arith.constant 0 : index
        %c0_67 = arith.constant 0 : index
        %85 = vector.load %arg16[%c0_66, %c0_67] : memref<1x32xf32, #tpu.memory_space<vmem>>, vector<1x32xf32>
        %c0_68 = arith.constant 0 : index
        %c0_69 = arith.constant 0 : index
        %86 = vector.load %arg27[%c0_68, %c0_69] : memref<2x32xf32, #tpu.memory_space<vmem>>, vector<1x32xf32>
        %cst_70 = arith.constant 0.001953125 : f32
        %87 = vector.broadcast %cst_70 : f32 to vector<1x32xf32>
        %88 = arith.mulf %86, %87 : vector<1x32xf32>
        %c1_71 = arith.constant 1 : index
        %c0_72 = arith.constant 0 : index
        %89 = vector.load %arg27[%c1_71, %c0_72] : memref<2x32xf32, #tpu.memory_space<vmem>>, vector<1x32xf32>
        %cst_73 = arith.constant 0.001953125 : f32
        %90 = vector.broadcast %cst_73 : f32 to vector<1x32xf32>
        %91 = arith.mulf %89, %90 : vector<1x32xf32>
        %92 = arith.mulf %88, %88 : vector<1x32xf32>
        %93 = arith.subf %91, %92 : vector<1x32xf32>
        %cst_74 = arith.constant 9.99999974E-6 : f32
        %94 = vector.broadcast %cst_74 : f32 to vector<1x32xf32>
        %95 = arith.addf %93, %94 : vector<1x32xf32>
        %96 = math.rsqrt %95 : vector<1x32xf32>
        %97 = arith.mulf %96, %84 : vector<1x32xf32>
        %98 = arith.mulf %88, %97 : vector<1x32xf32>
        %99 = arith.subf %85, %98 : vector<1x32xf32>
        %c0_75 = arith.constant 0 : index
        %c0_76 = arith.constant 0 : index
        %100 = vector.load %arg33[%c0_75, %c0_76] : memref<1x32xf32, #tpu.memory_space<vmem>>, vector<1x32xf32>
        tpu.vector_store %arg33[%c0_75, %c0_76], %97 {strides = array<i32>} : memref<1x32xf32, #tpu.memory_space<vmem>>, vector<1x32xf32>,
        %c0_77 = arith.constant 0 : index
        %c0_78 = arith.constant 0 : index
        %101 = vector.load %arg17[%c0_77, %c0_78] : memref<32x32xf32, #tpu.memory_space<vmem>>, vector<32x32xf32>
        %cst_79 = arith.constant dense<0.000000e+00> : vector<1x32xf32>
        %102 = tpu.matmul %99, %101, %cst_79 {dimension_numbers = #tpu.dot_dimension_numbers<[1], [0], [0], [1], [0, 0, 1, 1], [], []>} : vector<1x32xf32>, vector<32x32xf32>, vector<1x32xf32> -> vector<1x32xf32>
        %c0_80 = arith.constant 0 : index
        %c0_81 = arith.constant 0 : index
        %103 = vector.load %arg18[%c0_80, %c0_81] : memref<1x32xf32, #tpu.memory_space<vmem>>, vector<1x32xf32>
        %104 = arith.addf %102, %103 : vector<1x32xf32>
        %c0_82 = arith.constant 0 : index
        %c0_83 = arith.constant 0 : index
        %105 = vector.load %arg34[%c0_82, %c0_83] : memref<1x32xf32, #tpu.memory_space<vmem>>, vector<1x32xf32>
        tpu.vector_store %arg34[%c0_82, %c0_83], %104 {strides = array<i32>} : memref<1x32xf32, #tpu.memory_space<vmem>>, vector<1x32xf32>,
        %c3_i32 = arith.constant 3 : i32
        %106 = arith.cmpi eq, %arg0, %c3_i32 : i32
        %107 = arith.extui %106 : i1 to i32
        %c0_i32_84 = arith.constant 0 : i32
        %108 = arith.cmpi ne, %107, %c0_i32_84 : i32
        scf.if %108 {
          %c0_85 = arith.constant 0 : index
          %c0_86 = arith.constant 0 : index
          %109 = vector.load %arg19[%c0_85, %c0_86] : memref<1x32xf32, #tpu.memory_space<vmem>>, vector<1x32xf32>
          %c0_87 = arith.constant 0 : index
          %c0_88 = arith.constant 0 : index
          %110 = vector.load %arg20[%c0_87, %c0_88] : memref<1x32xf32, #tpu.memory_space<vmem>>, vector<1x32xf32>
          %c0_89 = arith.constant 0 : index
          %c0_90 = arith.constant 0 : index
          %111 = vector.load %arg28[%c0_89, %c0_90] : memref<2x32xf32, #tpu.memory_space<vmem>>, vector<1x32xf32>
          %cst_91 = arith.constant 0.001953125 : f32
          %112 = vector.broadcast %cst_91 : f32 to vector<1x32xf32>
          %113 = arith.mulf %111, %112 : vector<1x32xf32>
          %c1_92 = arith.constant 1 : index
          %c0_93 = arith.constant 0 : index
          %114 = vector.load %arg28[%c1_92, %c0_93] : memref<2x32xf32, #tpu.memory_space<vmem>>, vector<1x32xf32>
          %cst_94 = arith.constant 0.001953125 : f32
          %115 = vector.broadcast %cst_94 : f32 to vector<1x32xf32>
          %116 = arith.mulf %114, %115 : vector<1x32xf32>
          %117 = arith.mulf %113, %113 : vector<1x32xf32>
          %118 = arith.subf %116, %117 : vector<1x32xf32>
          %cst_95 = arith.constant 9.99999974E-6 : f32
          %119 = vector.broadcast %cst_95 : f32 to vector<1x32xf32>
          %120 = arith.addf %118, %119 : vector<1x32xf32>
          %121 = math.rsqrt %120 : vector<1x32xf32>
          %122 = arith.mulf %121, %109 : vector<1x32xf32>
          %123 = arith.mulf %113, %122 : vector<1x32xf32>
          %124 = arith.subf %110, %123 : vector<1x32xf32>
          %c0_96 = arith.constant 0 : index
          %c0_97 = arith.constant 0 : index
          %125 = vector.load %arg35[%c0_96, %c0_97] : memref<1x32xf32, #tpu.memory_space<vmem>>, vector<1x32xf32>
          tpu.vector_store %arg35[%c0_96, %c0_97], %122 {strides = array<i32>} : memref<1x32xf32, #tpu.memory_space<vmem>>, vector<1x32xf32>,
          %c0_98 = arith.constant 0 : index
          %c0_99 = arith.constant 0 : index
          %126 = vector.load %arg21[%c0_98, %c0_99] : memref<32x32xf32, #tpu.memory_space<vmem>>, vector<32x32xf32>
          %cst_100 = arith.constant dense<0.000000e+00> : vector<1x32xf32>
          %127 = tpu.matmul %124, %126, %cst_100 {dimension_numbers = #tpu.dot_dimension_numbers<[1], [0], [0], [1], [0, 0, 1, 1], [], []>} : vector<1x32xf32>, vector<32x32xf32>, vector<1x32xf32> -> vector<1x32xf32>
          %c0_101 = arith.constant 0 : index
          %c0_102 = arith.constant 0 : index
          %128 = vector.load %arg22[%c0_101, %c0_102] : memref<1x32xf32, #tpu.memory_space<vmem>>, vector<1x32xf32>
          %129 = arith.addf %127, %128 : vector<1x32xf32>
          %c0_103 = arith.constant 0 : index
          %c0_104 = arith.constant 0 : index
          %130 = vector.load %arg36[%c0_103, %c0_104] : memref<1x32xf32, #tpu.memory_space<vmem>>, vector<1x32xf32>
          tpu.vector_store %arg36[%c0_103, %c0_104], %129 {strides = array<i32>} : memref<1x32xf32, #tpu.memory_space<vmem>>, vector<1x32xf32>,
        } else {
        }
      } else {
      }
    } else {
    }
    %c1_i32_11 = arith.constant 1 : i32
    %16 = arith.cmpi sge, %arg0, %c1_i32_11 : i32
    %17 = arith.extui %16 : i1 to i32
    %c0_i32_12 = arith.constant 0 : i32
    %18 = arith.cmpi ne, %17, %c0_i32_12 : i32
    scf.if %18 {
      %c0_13 = arith.constant 0 : index
      %c0_14 = arith.constant 0 : index
      %19 = vector.load %arg29[%c0_13, %c0_14] : memref<1x16xf32, #tpu.memory_space<vmem>>, vector<1x16xf32>
      %20 = vector.broadcast %19 : vector<1x16xf32> to vector<128x16xf32>
      %21 = arith.mulf %5, %20 : vector<128x16xf32>
      %c0_15 = arith.constant 0 : index
      %c0_16 = arith.constant 0 : index
      %22 = vector.load %arg11[%c0_15, %c0_16] : memref<16x32xf32, #tpu.memory_space<vmem>>, vector<16x32xf32>
      %cst = arith.constant dense<0.000000e+00> : vector<128x32xf32>
      %23 = tpu.matmul %21, %22, %cst {dimension_numbers = #tpu.dot_dimension_numbers<[1], [0], [0], [1], [0, 0, 1, 1], [], []>} : vector<128x16xf32>, vector<16x32xf32>, vector<128x32xf32> -> vector<128x32xf32>
      %c0_17 = arith.constant 0 : index
      %c0_18 = arith.constant 0 : index
      %24 = vector.load %arg30[%c0_17, %c0_18] : memref<1x16xf32, #tpu.memory_space<vmem>>, vector<1x16xf32>
      %25 = vector.broadcast %24 : vector<1x16xf32> to vector<128x16xf32>
      %26 = arith.mulf %6, %25 : vector<128x16xf32>
      %c0_19 = arith.constant 0 : index
      %c0_20 = arith.constant 0 : index
      %27 = vector.load %arg12[%c0_19, %c0_20] : memref<16x32xf32, #tpu.memory_space<vmem>>, vector<16x32xf32>
      %cst_21 = arith.constant dense<0.000000e+00> : vector<128x32xf32>
      %28 = tpu.matmul %26, %27, %cst_21 {dimension_numbers = #tpu.dot_dimension_numbers<[1], [0], [0], [1], [0, 0, 1, 1], [], []>} : vector<128x16xf32>, vector<16x32xf32>, vector<128x32xf32> -> vector<128x32xf32>
      %29 = arith.addf %23, %28 : vector<128x32xf32>
      %c0_22 = arith.constant 0 : index
      %c0_23 = arith.constant 0 : index
      %30 = vector.load %arg31[%c0_22, %c0_23] : memref<1x16xf32, #tpu.memory_space<vmem>>, vector<1x16xf32>
      %31 = vector.broadcast %30 : vector<1x16xf32> to vector<128x16xf32>
      %32 = arith.mulf %7, %31 : vector<128x16xf32>
      %c0_24 = arith.constant 0 : index
      %c0_25 = arith.constant 0 : index
      %33 = vector.load %arg13[%c0_24, %c0_25] : memref<16x32xf32, #tpu.memory_space<vmem>>, vector<16x32xf32>
      %cst_26 = arith.constant dense<0.000000e+00> : vector<128x32xf32>
      %34 = tpu.matmul %32, %33, %cst_26 {dimension_numbers = #tpu.dot_dimension_numbers<[1], [0], [0], [1], [0, 0, 1, 1], [], []>} : vector<128x16xf32>, vector<16x32xf32>, vector<128x32xf32> -> vector<128x32xf32>
      %35 = arith.addf %29, %34 : vector<128x32xf32>
      %c0_27 = arith.constant 0 : index
      %c0_28 = arith.constant 0 : index
      %36 = vector.load %arg32[%c0_27, %c0_28] : memref<1x32xf32, #tpu.memory_space<vmem>>, vector<1x32xf32>
      %37 = vector.broadcast %36 : vector<1x32xf32> to vector<128x32xf32>
      %38 = arith.addf %35, %37 : vector<128x32xf32>
      %cst_29 = arith.constant 1.000000e-01 : f32
      %39 = vector.broadcast %cst_29 : f32 to vector<128x32xf32>
      %40 = arith.mulf %38, %39 : vector<128x32xf32>
      %41 = arith.maximumf %38, %40 : vector<128x32xf32>
      %c1_i32_30 = arith.constant 1 : i32
      %42 = arith.cmpi eq, %arg0, %c1_i32_30 : i32
      %43 = arith.extui %42 : i1 to i32
      %c0_i32_31 = arith.constant 0 : i32
      %44 = arith.cmpi ne, %43, %c0_i32_31 : i32
      scf.if %44 {
        %c0_33 = arith.constant 0 : index
        %c0_34 = arith.constant 0 : index
        %48 = vector.load %arg27[%c0_33, %c0_34] : memref<2x32xf32, #tpu.memory_space<vmem>>, vector<1x32xf32>
        %cst_35 = arith.constant dense<0.000000e+00> : vector<32xf32>
        %49 = vector.multi_reduction <add>, %41, %cst_35 [0] : vector<128x32xf32> to vector<32xf32>
        %50 = vector.shape_cast %49 : vector<32xf32> to vector<1x32xf32>
        %51 = arith.addf %48, %50 : vector<1x32xf32>
        %c0_36 = arith.constant 0 : index
        %c0_37 = arith.constant 0 : index
        %52 = vector.load %arg27[%c0_36, %c0_37] : memref<2x32xf32, #tpu.memory_space<vmem>>, vector<1x32xf32>
        tpu.vector_store %arg27[%c0_36, %c0_37], %51 {strides = array<i32>} : memref<2x32xf32, #tpu.memory_space<vmem>>, vector<1x32xf32>,
        %c1 = arith.constant 1 : index
        %c0_38 = arith.constant 0 : index
        %53 = vector.load %arg27[%c1, %c0_38] : memref<2x32xf32, #tpu.memory_space<vmem>>, vector<1x32xf32>
        %54 = arith.mulf %41, %41 : vector<128x32xf32>
        %cst_39 = arith.constant dense<0.000000e+00> : vector<32xf32>
        %55 = vector.multi_reduction <add>, %54, %cst_39 [0] : vector<128x32xf32> to vector<32xf32>
        %56 = vector.shape_cast %55 : vector<32xf32> to vector<1x32xf32>
        %57 = arith.addf %53, %56 : vector<1x32xf32>
        %c1_40 = arith.constant 1 : index
        %c0_41 = arith.constant 0 : index
        %58 = vector.load %arg27[%c1_40, %c0_41] : memref<2x32xf32, #tpu.memory_space<vmem>>, vector<1x32xf32>
        tpu.vector_store %arg27[%c1_40, %c0_41], %57 {strides = array<i32>} : memref<2x32xf32, #tpu.memory_space<vmem>>, vector<1x32xf32>,
      } else {
      }
      %c2_i32 = arith.constant 2 : i32
      %45 = arith.cmpi sge, %arg0, %c2_i32 : i32
      %46 = arith.extui %45 : i1 to i32
      %c0_i32_32 = arith.constant 0 : i32
      %47 = arith.cmpi ne, %46, %c0_i32_32 : i32
      scf.if %47 {
        %c0_33 = arith.constant 0 : index
        %c0_34 = arith.constant 0 : index
        %48 = vector.load %arg33[%c0_33, %c0_34] : memref<1x32xf32, #tpu.memory_space<vmem>>, vector<1x32xf32>
        %49 = vector.broadcast %48 : vector<1x32xf32> to vector<128x32xf32>
        %50 = arith.mulf %41, %49 : vector<128x32xf32>
        %c0_35 = arith.constant 0 : index
        %c0_36 = arith.constant 0 : index
        %51 = vector.load %arg17[%c0_35, %c0_36] : memref<32x32xf32, #tpu.memory_space<vmem>>, vector<32x32xf32>
        %cst_37 = arith.constant dense<0.000000e+00> : vector<128x32xf32>
        %52 = tpu.matmul %50, %51, %cst_37 {dimension_numbers = #tpu.dot_dimension_numbers<[1], [0], [0], [1], [0, 0, 1, 1], [], []>} : vector<128x32xf32>, vector<32x32xf32>, vector<128x32xf32> -> vector<128x32xf32>
        %c0_38 = arith.constant 0 : index
        %c0_39 = arith.constant 0 : index
        %53 = vector.load %arg34[%c0_38, %c0_39] : memref<1x32xf32, #tpu.memory_space<vmem>>, vector<1x32xf32>
        %54 = vector.broadcast %53 : vector<1x32xf32> to vector<128x32xf32>
        %55 = arith.addf %52, %54 : vector<128x32xf32>
        %cst_40 = arith.constant 1.000000e-01 : f32
        %56 = vector.broadcast %cst_40 : f32 to vector<128x32xf32>
        %57 = arith.mulf %55, %56 : vector<128x32xf32>
        %58 = arith.maximumf %55, %57 : vector<128x32xf32>
        %c2_i32_41 = arith.constant 2 : i32
        %59 = arith.cmpi eq, %arg0, %c2_i32_41 : i32
        %60 = arith.extui %59 : i1 to i32
        %c0_i32_42 = arith.constant 0 : i32
        %61 = arith.cmpi ne, %60, %c0_i32_42 : i32
        scf.if %61 {
          %c0_44 = arith.constant 0 : index
          %c0_45 = arith.constant 0 : index
          %65 = vector.load %arg28[%c0_44, %c0_45] : memref<2x32xf32, #tpu.memory_space<vmem>>, vector<1x32xf32>
          %cst_46 = arith.constant dense<0.000000e+00> : vector<32xf32>
          %66 = vector.multi_reduction <add>, %58, %cst_46 [0] : vector<128x32xf32> to vector<32xf32>
          %67 = vector.shape_cast %66 : vector<32xf32> to vector<1x32xf32>
          %68 = arith.addf %65, %67 : vector<1x32xf32>
          %c0_47 = arith.constant 0 : index
          %c0_48 = arith.constant 0 : index
          %69 = vector.load %arg28[%c0_47, %c0_48] : memref<2x32xf32, #tpu.memory_space<vmem>>, vector<1x32xf32>
          tpu.vector_store %arg28[%c0_47, %c0_48], %68 {strides = array<i32>} : memref<2x32xf32, #tpu.memory_space<vmem>>, vector<1x32xf32>,
          %c1 = arith.constant 1 : index
          %c0_49 = arith.constant 0 : index
          %70 = vector.load %arg28[%c1, %c0_49] : memref<2x32xf32, #tpu.memory_space<vmem>>, vector<1x32xf32>
          %71 = arith.mulf %58, %58 : vector<128x32xf32>
          %cst_50 = arith.constant dense<0.000000e+00> : vector<32xf32>
          %72 = vector.multi_reduction <add>, %71, %cst_50 [0] : vector<128x32xf32> to vector<32xf32>
          %73 = vector.shape_cast %72 : vector<32xf32> to vector<1x32xf32>
          %74 = arith.addf %70, %73 : vector<1x32xf32>
          %c1_51 = arith.constant 1 : index
          %c0_52 = arith.constant 0 : index
          %75 = vector.load %arg28[%c1_51, %c0_52] : memref<2x32xf32, #tpu.memory_space<vmem>>, vector<1x32xf32>
          tpu.vector_store %arg28[%c1_51, %c0_52], %74 {strides = array<i32>} : memref<2x32xf32, #tpu.memory_space<vmem>>, vector<1x32xf32>,
        } else {
        }
        %c3_i32 = arith.constant 3 : i32
        %62 = arith.cmpi eq, %arg0, %c3_i32 : i32
        %63 = arith.extui %62 : i1 to i32
        %c0_i32_43 = arith.constant 0 : i32
        %64 = arith.cmpi ne, %63, %c0_i32_43 : i32
        scf.if %64 {
          %c0_44 = arith.constant 0 : index
          %c0_45 = arith.constant 0 : index
          %65 = vector.load %arg35[%c0_44, %c0_45] : memref<1x32xf32, #tpu.memory_space<vmem>>, vector<1x32xf32>
          %66 = vector.broadcast %65 : vector<1x32xf32> to vector<128x32xf32>
          %67 = arith.mulf %58, %66 : vector<128x32xf32>
          %c0_46 = arith.constant 0 : index
          %c0_47 = arith.constant 0 : index
          %68 = vector.load %arg21[%c0_46, %c0_47] : memref<32x32xf32, #tpu.memory_space<vmem>>, vector<32x32xf32>
          %cst_48 = arith.constant dense<0.000000e+00> : vector<128x32xf32>
          %69 = tpu.matmul %67, %68, %cst_48 {dimension_numbers = #tpu.dot_dimension_numbers<[1], [0], [0], [1], [0, 0, 1, 1], [], []>} : vector<128x32xf32>, vector<32x32xf32>, vector<128x32xf32> -> vector<128x32xf32>
          %c0_49 = arith.constant 0 : index
          %c0_50 = arith.constant 0 : index
          %70 = vector.load %arg36[%c0_49, %c0_50] : memref<1x32xf32, #tpu.memory_space<vmem>>, vector<1x32xf32>
          %71 = vector.broadcast %70 : vector<1x32xf32> to vector<128x32xf32>
          %72 = arith.addf %69, %71 : vector<128x32xf32>
          %c0_51 = arith.constant 0 : index
          %c0_52 = arith.constant 0 : index
          %73 = vector.load %arg23[%c0_51, %c0_52] : memref<128x32xf32, #tpu.memory_space<vmem>>, vector<128x32xf32>
          tpu.vector_store %arg23[%c0_51, %c0_52], %72 {strides = array<i32>} : memref<128x32xf32, #tpu.memory_space<vmem>>, vector<128x32xf32>,
        } else {
        }
      } else {
      }
    } else {
    }
    return
  }
  func.func @transform_0(%arg0: i32, %arg1: i32) -> (i32, i32) {
    %c0_i32 = arith.constant 0 : i32
    %c0_i32_0 = arith.constant 0 : i32
    return %arg1, %c0_i32 : i32, i32
  }
  func.func @transform_1(%arg0: i32, %arg1: i32) -> (i32, i32) {
    %c0_i32 = arith.constant 0 : i32
    %c0_i32_0 = arith.constant 0 : i32
    return %arg1, %c0_i32 : i32, i32
  }
  func.func @transform_2(%arg0: i32, %arg1: i32) -> (i32, i32) {
    %c0_i32 = arith.constant 0 : i32
    %c0_i32_0 = arith.constant 0 : i32
    return %arg1, %c0_i32 : i32, i32
  }
  func.func @transform_3(%arg0: i32, %arg1: i32) -> (i32, i32) {
    %c0_i32 = arith.constant 0 : i32
    %c0_i32_0 = arith.constant 0 : i32
    %c0_i32_1 = arith.constant 0 : i32
    return %c0_i32, %c0_i32_0 : i32, i32
  }
  func.func @transform_4(%arg0: i32, %arg1: i32) -> (i32, i32) {
    %c0_i32 = arith.constant 0 : i32
    %c0_i32_0 = arith.constant 0 : i32
    %c0_i32_1 = arith.constant 0 : i32
    return %c0_i32, %c0_i32_0 : i32, i32
  }
  func.func @transform_5(%arg0: i32, %arg1: i32) -> (i32, i32) {
    %c0_i32 = arith.constant 0 : i32
    %c0_i32_0 = arith.constant 0 : i32
    %c0_i32_1 = arith.constant 0 : i32
    return %c0_i32, %c0_i32_0 : i32, i32
  }
  func.func @transform_6(%arg0: i32, %arg1: i32) -> (i32, i32) {
    %c0_i32 = arith.constant 0 : i32
    %c0_i32_0 = arith.constant 0 : i32
    %c0_i32_1 = arith.constant 0 : i32
    return %c0_i32, %c0_i32_0 : i32, i32
  }
  func.func @transform_7(%arg0: i32, %arg1: i32) -> (i32, i32) {
    %c0_i32 = arith.constant 0 : i32
    %c0_i32_0 = arith.constant 0 : i32
    %c0_i32_1 = arith.constant 0 : i32
    return %c0_i32, %c0_i32_0 : i32, i32
  }
  func.func @transform_8(%arg0: i32, %arg1: i32) -> (i32, i32) {
    %c0_i32 = arith.constant 0 : i32
    %c0_i32_0 = arith.constant 0 : i32
    %c0_i32_1 = arith.constant 0 : i32
    return %c0_i32, %c0_i32_0 : i32, i32
  }
  func.func @transform_9(%arg0: i32, %arg1: i32) -> (i32, i32) {
    %c0_i32 = arith.constant 0 : i32
    %c0_i32_0 = arith.constant 0 : i32
    %c0_i32_1 = arith.constant 0 : i32
    return %c0_i32, %c0_i32_0 : i32, i32
  }
  func.func @transform_10(%arg0: i32, %arg1: i32) -> (i32, i32) {
    %c0_i32 = arith.constant 0 : i32
    %c0_i32_0 = arith.constant 0 : i32
    %c0_i32_1 = arith.constant 0 : i32
    return %c0_i32, %c0_i32_0 : i32, i32
  }
  func.func @transform_11(%arg0: i32, %arg1: i32) -> (i32, i32) {
    %c0_i32 = arith.constant 0 : i32
    %c0_i32_0 = arith.constant 0 : i32
    %c0_i32_1 = arith.constant 0 : i32
    return %c0_i32, %c0_i32_0 : i32, i32
  }
  func.func @transform_12(%arg0: i32, %arg1: i32) -> (i32, i32) {
    %c0_i32 = arith.constant 0 : i32
    %c0_i32_0 = arith.constant 0 : i32
    %c0_i32_1 = arith.constant 0 : i32
    return %c0_i32, %c0_i32_0 : i32, i32
  }
  func.func @transform_13(%arg0: i32, %arg1: i32) -> (i32, i32) {
    %c0_i32 = arith.constant 0 : i32
    %c0_i32_0 = arith.constant 0 : i32
    %c0_i32_1 = arith.constant 0 : i32
    return %c0_i32, %c0_i32_0 : i32, i32
  }
  func.func @transform_14(%arg0: i32, %arg1: i32) -> (i32, i32) {
    %c0_i32 = arith.constant 0 : i32
    %c0_i32_0 = arith.constant 0 : i32
    %c0_i32_1 = arith.constant 0 : i32
    return %c0_i32, %c0_i32_0 : i32, i32
  }
  func.func @transform_15(%arg0: i32, %arg1: i32) -> (i32, i32) {
    %c0_i32 = arith.constant 0 : i32
    %c0_i32_0 = arith.constant 0 : i32
    %c0_i32_1 = arith.constant 0 : i32
    return %c0_i32, %c0_i32_0 : i32, i32
  }
  func.func @transform_16(%arg0: i32, %arg1: i32) -> (i32, i32) {
    %c0_i32 = arith.constant 0 : i32
    %c0_i32_0 = arith.constant 0 : i32
    %c0_i32_1 = arith.constant 0 : i32
    return %c0_i32, %c0_i32_0 : i32, i32
  }
  func.func @transform_17(%arg0: i32, %arg1: i32) -> (i32, i32) {
    %c0_i32 = arith.constant 0 : i32
    %c0_i32_0 = arith.constant 0 : i32
    %c0_i32_1 = arith.constant 0 : i32
    return %c0_i32, %c0_i32_0 : i32, i32
  }
  func.func @transform_18(%arg0: i32, %arg1: i32) -> (i32, i32) {
    %c0_i32 = arith.constant 0 : i32
    %c0_i32_0 = arith.constant 0 : i32
    %c0_i32_1 = arith.constant 0 : i32
    return %c0_i32, %c0_i32_0 : i32, i32
  }
  func.func @transform_19(%arg0: i32, %arg1: i32) -> (i32, i32) {
    %c0_i32 = arith.constant 0 : i32
    %c0_i32_0 = arith.constant 0 : i32
    %c0_i32_1 = arith.constant 0 : i32
    return %c0_i32, %c0_i32_0 : i32, i32
  }
  func.func @transform_20(%arg0: i32, %arg1: i32) -> (i32, i32) {
    %c0_i32 = arith.constant 0 : i32
    %c0_i32_0 = arith.constant 0 : i32
    %c0_i32_1 = arith.constant 0 : i32
    return %c0_i32, %c0_i32_0 : i32, i32
  }
  func.func @transform_21(%arg0: i32, %arg1: i32) -> (i32, i32) {
    %c3_i32 = arith.constant 3 : i32
    %0 = arith.cmpi eq, %arg0, %c3_i32 : i32
    %c0_i32 = arith.constant 0 : i32
    %1 = arith.select %0, %arg1, %c0_i32 : i32
    %c0_i32_0 = arith.constant 0 : i32
    %c0_i32_1 = arith.constant 0 : i32
    return %1, %c0_i32_0 : i32, i32
  }
}

</mosaic_0001>

<bundles_post_ra>
// kernel: tpu_custom_call.1
= control target key start
LH: loop header
LB: loop body
LE: loop exit
PB: predicated region body
PF: predicated region fallthrough
CT: control target
= control target key end

     0   :  { %s3828_s25 = smov 0   ;;  %s3830_s26 = smov 0   ;;  %s4942_s0 = inlined_call_operand.vmem [shape: f32[512,16], index: 0, kind: input, shape index: {}]   ;;  %s4943_s1 = inlined_call_operand.vmem [shape: f32[512,16], index: 1, kind: input, shape index: {}]   ;;  %s4944_s2 = inlined_call_operand.vmem [shape: f32[512,16], index: 2, kind: input, shape index: {}]   ;;  %s4945_s3 = inlined_call_operand.vmem [shape: f32[1,16], index: 3, kind: input, shape index: {}]   ;;  %s4946_s4 = inlined_call_operand.vmem [shape: f32[1,16], index: 4, kind: input, shape index: {}]   ;;  %s4947_s5 = inlined_call_operand.vmem [shape: f32[1,16], index: 5, kind: input, shape index: {}]   ;;  %s4948_s6 = inlined_call_operand.vmem [shape: f32[1,16], index: 6, kind: input, shape index: {}]   ;;  %s4949_s7 = inlined_call_operand.vmem [shape: f32[1,16], index: 7, kind: input, shape index: {}]   ;;  %s4950_s8 = inlined_call_operand.vmem [shape: f32[1,16], index: 8, kind: input, shape index: {}]   ;;  %s4951_s9 = inlined_call_operand.vmem [shape: f32[16,32], index: 9, kind: input, shape index: {}]   ;;  %s4952_s10 = inlined_call_operand.vmem [shape: f32[16,32], index: 10, kind: input, shape index: {}]   ;;  %s4953_s11 = inlined_call_operand.vmem [shape: f32[16,32], index: 11, kind: input, shape index: {}]   ;;  %s4954_s12 = inlined_call_operand.vmem [shape: f32[1,32], index: 12, kind: input, shape index: {}]   ;;  %s4955_s13 = inlined_call_operand.vmem [shape: f32[1,32], index: 13, kind: input, shape index: {}]   ;;  %s4956_s14 = inlined_call_operand.vmem [shape: f32[1,32], index: 14, kind: input, shape index: {}]   ;;  %s4957_s15 = inlined_call_operand.vmem [shape: f32[32,32], index: 15, kind: input, shape index: {}]   ;;  %s4958_s16 = inlined_call_operand.vmem [shape: f32[1,32], index: 16, kind: input, shape index: {}]   ;;  %s4959_s17 = inlined_call_operand.vmem [shape: f32[1,32], index: 17, kind: input, shape index: {}]   ;;  %s4960_s18 = inlined_call_operand.vmem [shape: f32[1,32], index: 18, kind: input, shape index: {}]   ;;  %s4961_s19 = inlined_call_operand.vmem [shape: f32[32,32], index: 19, kind: input, shape index: {}]   ;;  %s4962_s20 = inlined_call_operand.vmem [shape: f32[1,32], index: 20, kind: input, shape index: {}]   ;;  %s4963_s21 = inlined_call_operand.vmem [shape: f32[512,32], index: 21, kind: output, shape index: {}]  }
   0x1   :  { %4988 = sst [smem:[#allocation39_spill]] %s4942_s0  ;;  %s3832_s27 = smov 0  }
   0x2   :  { %4989 = sst [smem:[#allocation40_spill]] %s4943_s1 }
   0x3   :  { %4990 = sst [smem:[#allocation41_spill]] %s4944_s2  ;;  %s3826_s2 = smov 0  }
   0x4   :  { %4991 = sst [smem:[#allocation42_spill]] %s4945_s3  ;;  %s3834_s3 = smov 0  }
   0x5   :  { %4992 = sst [smem:[#allocation43_spill]] %s4946_s4 }
   0x6   :  { %4993 = sst [smem:[#allocation44_spill]] %s4947_s5 }
   0x7   :  { %4994 = sst [smem:[#allocation45_spill]] %s4959_s17 }
   0x8   :  { %4995 = sst [smem:[#allocation46_spill]] %s4960_s18 }
   0x9   :  { %4996 = sst [smem:[#allocation47_spill]] %s4961_s19 }
   0xa   :  { %4997 = sst [smem:[#allocation48_spill]] %s4962_s20 }
   0xb LB: > { %4998 = sst [smem:[#allocation15_spill]] %s3696_s26  ;;  %s40_s28 = sadd.s32 1, %s3696_s26  ;;  %s3704_s3 = sphi %s3834_s3, %s31_s3   ;;  %s3700_s27 = sphi %s3832_s27, %s5059_s27   ;;  %s3696_s26 = sphi %s3830_s26, %s5058_s26   ;;  %s3692_s25 = sphi %s3828_s25, %s5057_s25   ;;  %s3688_s2 = sphi %s3826_s2, %s5056_s2  }
   0xc   : > { %4999 = sst [smem:[#allocation16_spill]] %s3700_s27  ;;  %s43_s29 = sadd.s32 1, %s3700_s27 }
   0xd   : > { %5000 = sst [smem:[#allocation17_spill]] %s3704_s3  ;;  %p41_p0 = scmp.ge.s32.totalorder %s40_s28, 4 }
   0xe   : > { %p3099_p1 = scmp.ge.s32.totalorder %s3704_s3, 1  ;;  %p626_p2 = scmp.lt.s32.totalorder %s3704_s3, 17 }
   0xf   : > { %s5061_s28 = smov (%p41_p0, %s40_s28), 0  ;;  %s5063_s29 = smov (!%p41_p0, %s43_s29), %s3700_s27 }
  0x10   : > { %5001 = sst [smem:[#allocation18_spill]] %s5061_s28  ;;  %p627_p3 = pnand %p3099_p1, %p626_p2 }
  0x11   : > { %p45_p4 = scmp.ge.s32.totalorder %s5063_s29, 4 }
  0x12   : > { %630 = sbr.rel (%p627_p3) target bundleno = 1657 (0x679), region = 104 }
  0x13   : > { %s5065_s29 = smov (%p45_p4, %s5063_s29), 0 }
  0x14   : > { %5002 = sst [smem:[#allocation19_spill]] %s5065_s29 }
  0x19   : > { %s3100_s0 = sshll.u32 %s3688_s2, 4  ;;  %p716_p5 = scmp.eq.s32.totalorder %s3692_s25, 3 }
  0x1a   : > { %p699_p6 = scmp.lt.s32.totalorder %s3100_s0, 63  ;;  %p726_p7 = scmp.eq.s32.totalorder %s3692_s25, 0 }
  0x1b   : > { %s717_s4 = scalar_select %p716_p5, %s3688_s2, 0 }
  0x1c   : > { %s5067_s0 = smov (!%p699_p6, %s3100_s0), 63  ;;  %p727_p8 = scmp.eq.s32.totalorder %s3688_s2, 0 }
  0x1d   : > { %s3106_s30 = sshll.u32 %s717_s4, 4  ;;  %s3101_s5 = sshll.u32 %s5067_s0, 3 }
  0x1e   : > { %p719_p9 = scmp.lt.s32.totalorder %s3106_s30, 63  ;;  %s5003_s1 = sld [smem:[#allocation39_spill]] }
  0x1f   : > { %s5004_s27 = sld [smem:[#allocation40_spill]]  ;;  %s5005_s18 = sld [smem:[#allocation41_spill]] }
  0x20   : > { %p728_p10 = pnand %p727_p8, %p726_p7  ;;  %s5069_s30 = smov (!%p719_p9, %s3106_s30), 63 }
  0x21   : > { %s3107_s0 = sshll.u32 %s5069_s30, 3  ;;  %vm732_vm0 = vcmask (!%p728_p10), 123904   ;;  %vm736_vm1 = vcmask (!%p728_p10), 254976   ;;  %v3706_v0 = vmov (!%p728_p10), 0.0  }
  0x22   : > { %s3885_s22 = scalar_lea.vmem %s4963_s21, %s3107_s0  ;;  %731 = sbr.rel (%p728_p10) target bundleno = 41 (0x29), region = 108  ;;  %733 = vst.msk [vmem:[#allocation2] sm:$0x3] (!%p728_p10), %vm732_vm0, %v3706_v0  ;;  %734 = vst.msk [vmem:[#allocation3] sm:$0x3] (!%p728_p10), %vm732_vm0, %v3706_v0 }
  0x23   : > { %735 = vst.msk [vmem:[#allocation4] sm:$0x3] (!%p728_p10), %vm732_vm0, %v3706_v0 }
  0x24   : > { %s3868_s24 = scalar_lea.vmem %s5003_s1, %s3101_s5  ;;  %737 = vst.msk [vmem:[#allocation5] sm:$0x3] (!%p728_p10), %vm736_vm1, %v3706_v0  ;;  %738 = vst.msk [vmem:[#allocation6] sm:$0x3] (!%p728_p10), %vm736_vm1, %v3706_v0 }
  0x25   : > { %s3873_s26 = scalar_lea.vmem %s5004_s27, %s3101_s5  ;;  %s3878_s17 = scalar_lea.vmem %s5005_s18, %s3101_s5 }
  0x29 PF: > { %v3888_v1 = vld [vmem:[%s3868_s24] sm:$0xff]  ;;  %v3891_v2 = vld [vmem:[%s3868_s24 + $0x8] sm:$0xff]  ;;  %v3894_v3 = vld [vmem:[%s3868_s24 + $0x10] sm:$0xff]  ;;  %p3108_p11 = scmp.ne.s32.totalorder %s3692_s25, 0 }
  0x2a   : > { %5006 = vst [vmem:[#allocation20_spill] sm:$0xff] %v3888_v1  ;;  %5007 = vst [vmem:[#allocation21_spill] sm:$0xff] %v3891_v2  ;;  %v3897_v4 = vld [vmem:[%s3868_s24 + $0x18] sm:$0xff]  ;;  %v3900_v5 = vld [vmem:[%s3868_s24 + $0x20] sm:$0xff]  ;;  %vm791_vm2 = vcmask (!%p3108_p11), 130048   ;;  %v833_v56 = vmul.f32 (!%p3108_p11), %v3888_v1, %v3888_v1  ;;  %v834_v57 = vmul.f32 (!%p3108_p11), %v3891_v2, %v3891_v2  ;;  %v835_v60 = vmul.f32 (!%p3108_p11), %v3894_v3, %v3894_v3 }
  0x2b   : > { %5008 = vst [vmem:[#allocation22_spill] sm:$0xff] %v3894_v3  ;;  %5009 = vst [vmem:[#allocation23_spill] sm:$0xff] %v3897_v4  ;;  %v3903_v6 = vld [vmem:[%s3868_s24 + $0x28] sm:$0xff]  ;;  %v3906_v7 = vld [vmem:[%s3868_s24 + $0x30] sm:$0xff]  ;;  %v792_v49 = vsel (!%p3108_p11), %vm791_vm2, %v3888_v1, 0.0  ;;  %v793_v50 = vsel (!%p3108_p11), %vm791_vm2, %v3891_v2, 0.0  ;;  %v836_v0 = vmul.f32 (!%p3108_p11), %v3897_v4, %v3897_v4 }
  0x2c   : > { %5010 = vst [vmem:[#allocation24_spill] sm:$0xff] %v3900_v5  ;;  %5011 = vst [vmem:[#allocation25_spill] sm:$0xff] %v3903_v6  ;;  %v3909_v8 = vld [vmem:[%s3868_s24 + $0x38] sm:$0xff]  ;;  %v3912_v9 = vld [vmem:[%s3868_s24 + $0x40] sm:$0xff]  ;;  %v795_v51 = vsel (!%p3108_p11), %vm791_vm2, %v3894_v3, 0.0  ;;  %v794_v52 = vadd.f32 (!%p3108_p11), %v793_v50, %v792_v49  ;;  %v797_v53 = vsel (!%p3108_p11), %vm791_vm2, %v3897_v4, 0.0 }
  0x2d   : > { %5012 = vst [vmem:[#allocation26_spill] sm:$0xff] %v3906_v7  ;;  %5013 = vst [vmem:[#allocation27_spill] sm:$0xff] %v3909_v8  ;;  %v3915_v10 = vld [vmem:[%s3868_s24 + $0x48] sm:$0xff]  ;;  %v3918_v11 = vld [vmem:[%s3868_s24 + $0x50] sm:$0xff]  ;;  %v799_v55 = vsel (!%p3108_p11), %vm791_vm2, %v3900_v5, 0.0  ;;  %v801_v59 = vsel (!%p3108_p11), %vm791_vm2, %v3903_v6, 0.0 }
  0x2e   : > { %5014 = vst [vmem:[#allocation28_spill] sm:$0xff] %v3912_v9  ;;  %5015 = vst [vmem:[#allocation29_spill] sm:$0xff] %v3915_v10  ;;  %v3921_v12 = vld [vmem:[%s3868_s24 + $0x58] sm:$0xff]  ;;  %v3924_v13 = vld [vmem:[%s3868_s24 + $0x60] sm:$0xff]  ;;  %v796_v54 = vadd.f32 (!%p3108_p11), %v795_v51, %v794_v52  ;;  %v803_v61 = vsel (!%p3108_p11), %vm791_vm2, %v3906_v7, 0.0  ;;  %v805_v62 = vsel (!%p3108_p11), %vm791_vm2, %v3909_v8, 0.0 }
  0x2f   : > { %5016 = vst [vmem:[#allocation30_spill] sm:$0xff] %v3918_v11  ;;  %5017 = vst [vmem:[#allocation31_spill] sm:$0xff] %v3921_v12  ;;  %v3927_v14 = vld [vmem:[%s3868_s24 + $0x68] sm:$0xff]  ;;  %v3930_v15 = vld [vmem:[%s3868_s24 + $0x70] sm:$0xff]  ;;  %v807_v63 = vsel (!%p3108_p11), %vm791_vm2, %v3912_v9, 0.0  ;;  %v809_v50 = vsel (!%p3108_p11), %vm791_vm2, %v3915_v10, 0.0 }
  0x30   : > { %5018 = vst [vmem:[#allocation32_spill] sm:$0xff] %v3924_v13  ;;  %5019 = vst [vmem:[#allocation33_spill] sm:$0xff] %v3927_v14  ;;  %v3933_v16 = vld [vmem:[%s3868_s24 + $0x78] sm:$0xff]  ;;  %v3936_v17 = vld [vmem:[%s3873_s26] sm:$0xff]  ;;  %v798_v58 = vadd.f32 (!%p3108_p11), %v797_v53, %v796_v54  ;;  %v811_v51 = vsel (!%p3108_p11), %vm791_vm2, %v3918_v11, 0.0  ;;  %v813_v52 = vsel (!%p3108_p11), %vm791_vm2, %v3921_v12, 0.0  ;;  %v837_v54 = vmul.f32 (!%p3108_p11), %v3900_v5, %v3900_v5 }
  0x31   : > { %5020 = vst [vmem:[#allocation34_spill] sm:$0xff] %v3930_v15  ;;  %5021 = vst [vmem:[#allocation35_spill] sm:$0xff] %v3933_v16  ;;  %v3939_v18 = vld [vmem:[%s3873_s26 + $0x8] sm:$0xff]  ;;  %v3942_v19 = vld [vmem:[%s3873_s26 + $0x10] sm:$0xff]  ;;  %v815_v53 = vsel (!%p3108_p11), %vm791_vm2, %v3924_v13, 0.0  ;;  %v849_v3 = vsel (!%p3108_p11), %vm791_vm2, %v833_v56, 0.0  ;;  %v838_v56 = vmul.f32 (!%p3108_p11), %v3903_v6, %v3903_v6  ;;  %v842_v5 = vmul.f32 (!%p3108_p11), %v3915_v10, %v3915_v10 }
  0x32   : > { %v3945_v20 = vld [vmem:[%s3873_s26 + $0x18] sm:$0xff]  ;;  %v3948_v21 = vld [vmem:[%s3873_s26 + $0x20] sm:$0xff]  ;;  %v3951_v22 = vld [vmem:[%s3873_s26 + $0x28] sm:$0xff]  ;;  %v800_v49 = vadd.f32 (!%p3108_p11), %v799_v55, %v798_v58  ;;  %v850_v4 = vsel (!%p3108_p11), %vm791_vm2, %v834_v57, 0.0  ;;  %v4072_v58 = vsel (!%p3108_p11), %vm791_vm2, %v3927_v14, 0.0  ;;  %v852_v1 = vsel (!%p3108_p11), %vm791_vm2, %v835_v60, 0.0 }
  0x33   : > { %v3954_v23 = vld [vmem:[%s3873_s26 + $0x30] sm:$0xff]  ;;  %v3957_v24 = vld [vmem:[%s3873_s26 + $0x38] sm:$0xff]  ;;  %v3960_v25 = vld [vmem:[%s3873_s26 + $0x40] sm:$0xff]  ;;  %v851_v2 = vadd.f32 (!%p3108_p11), %v850_v4, %v849_v3  ;;  %v854_v57 = vsel (!%p3108_p11), %vm791_vm2, %v836_v0, 0.0  ;;  %v840_v3 = vmul.f32 (!%p3108_p11), %v3909_v8, %v3909_v8  ;;  %v841_v60 = vmul.f32 (!%p3108_p11), %v3912_v9, %v3912_v9 }
  0x34   : > { %v3963_v26 = vld [vmem:[%s3873_s26 + $0x48] sm:$0xff]  ;;  %v3966_v27 = vld [vmem:[%s3873_s26 + $0x50] sm:$0xff]  ;;  %v3969_v28 = vld [vmem:[%s3873_s26 + $0x58] sm:$0xff]  ;;  %v802_v55 = vadd.f32 (!%p3108_p11), %v801_v59, %v800_v49  ;;  %v839_v49 = vmul.f32 (!%p3108_p11), %v3906_v7, %v3906_v7  ;;  %v856_v6 = vsel (!%p3108_p11), %vm791_vm2, %v837_v54, 0.0  ;;  %v890_v10 = vsel (!%p3108_p11), %vm791_vm2, %v3939_v18, 0.0 }
  0x35   : > { %v3972_v29 = vld [vmem:[%s3873_s26 + $0x60] sm:$0xff]  ;;  %v3975_v30 = vld [vmem:[%s3873_s26 + $0x68] sm:$0xff]  ;;  %v3978_v31 = vld [vmem:[%s3873_s26 + $0x70] sm:$0xff]  ;;  %v853_v4 = vadd.f32 (!%p3108_p11), %v852_v1, %v851_v2  ;;  %v858_v1 = vsel (!%p3108_p11), %vm791_vm2, %v838_v56, 0.0  ;;  %v889_v2 = vsel (!%p3108_p11), %vm791_vm2, %v3936_v17, 0.0  ;;  %v848_v56 = vmul.f32 (!%p3108_p11), %v3933_v16, %v3933_v16 }
  0x36   : > { %v3981_v32 = vld [vmem:[%s3873_s26 + $0x78] sm:$0xff]  ;;  %v3984_v33 = vld [vmem:[%s3878_s17] sm:$0xff]  ;;  %v3987_v34 = vld [vmem:[%s3878_s17 + $0x8] sm:$0xff]  ;;  %789 = sbr.rel (%p3108_p11) target bundleno = 140 (0x8c), region = 112  ;;  %v804_v59 = vadd.f32 (!%p3108_p11), %v803_v61, %v802_v55  ;;  %v844_v61 = vmul.f32 (!%p3108_p11), %v3921_v12, %v3921_v12  ;;  %v845_v55 = vmul.f32 (!%p3108_p11), %v3924_v13, %v3924_v13  ;;  %v891_v12 = vadd.f32 (!%p3108_p11), %v890_v10, %v889_v2 }
  0x37   : > { %v3990_v35 = vld [vmem:[%s3878_s17 + $0x10] sm:$0xff]  ;;  %v3993_v36 = vld [vmem:[%s3878_s17 + $0x18] sm:$0xff]  ;;  %v3996_v37 = vld [vmem:[%s3878_s17 + $0x20] sm:$0xff]  ;;  %v855_v8 = vadd.f32 (!%p3108_p11), %v854_v57, %v853_v4  ;;  %v847_v57 = vmul.f32 (!%p3108_p11), %v3930_v15, %v3930_v15  ;;  %v860_v4 = vsel (!%p3108_p11), %vm791_vm2, %v839_v49, 0.0  ;;  %v894_v13 = vsel (!%p3108_p11), %vm791_vm2, %v3945_v20, 0.0 }
  0x38   : > { %v3999_v38 = vld [vmem:[%s3878_s17 + $0x28] sm:$0xff]  ;;  %v4002_v39 = vld [vmem:[%s3878_s17 + $0x30] sm:$0xff]  ;;  %v4005_v40 = vld [vmem:[%s3878_s17 + $0x38] sm:$0xff]  ;;  %v806_v0 = vadd.f32 (!%p3108_p11), %v805_v62, %v804_v59  ;;  %v846_v62 = vmul.f32 (!%p3108_p11), %v3927_v14, %v3927_v14  ;;  %v864_v14 = vsel (!%p3108_p11), %vm791_vm2, %v841_v60, 0.0  ;;  %v896_v10 = vsel (!%p3108_p11), %vm791_vm2, %v3948_v21, 0.0 }
  0x39   : > { %v4008_v41 = vld [vmem:[%s3878_s17 + $0x40] sm:$0xff]  ;;  %v4011_v42 = vld [vmem:[%s3878_s17 + $0x48] sm:$0xff]  ;;  %v4014_v43 = vld [vmem:[%s3878_s17 + $0x50] sm:$0xff]  ;;  %v857_v59 = vadd.f32 (!%p3108_p11), %v856_v6, %v855_v8  ;;  %v866_v6 = vsel (!%p3108_p11), %vm791_vm2, %v842_v5, 0.0  ;;  %v870_v49 = vsel (!%p3108_p11), %vm791_vm2, %v844_v61, 0.0  ;;  %vm830_vm3 = vcmask (!%p3108_p11), 122880  }
  0x3a   : > { %v4017_v44 = vld [vmem:[%s3878_s17 + $0x58] sm:$0xff]  ;;  %v4020_v45 = vld [vmem:[%s3878_s17 + $0x60] sm:$0xff]  ;;  %v4023_v46 = vld [vmem:[%s3878_s17 + $0x68] sm:$0xff]  ;;  %v808_v54 = vadd.f32 (!%p3108_p11), %v807_v63, %v806_v0  ;;  %v862_v63 = vsel (!%p3108_p11), %vm791_vm2, %v840_v3, 0.0 }
  0x3b   : > { %5022 = vst [vmem:[#allocation36_spill] sm:$0xff] %v4023_v46  ;;  %v4026_v47 = vld [vmem:[%s3878_s17 + $0x70] sm:$0xff]  ;;  %v4029_v48 = vld [vmem:[%s3878_s17 + $0x78] sm:$0xff]  ;;  %v843_v46 = vmul.f32 (!%p3108_p11), %v3918_v11, %v3918_v11  ;;  %v892_v11 = vsel (!%p3108_p11), %vm791_vm2, %v3942_v19, 0.0  ;;  %v859_v7 = vadd.f32 (!%p3108_p11), %v858_v1, %v857_v59  ;;  %v874_v1 = vsel (!%p3108_p11), %vm791_vm2, %v846_v62, 0.0 }
  0x3c   : > { %5023 = vst [vmem:[#allocation37_spill] sm:$0xff] %v4026_v47  ;;  %5024 = vst [vmem:[#allocation38_spill] sm:$0xff] %v4029_v48  ;;  %v4077_v48 = vsel (!%p3108_p11), %vm791_vm2, %v3930_v15, 0.0  ;;  %v4081_v47 = vsel (!%p3108_p11), %vm791_vm2, %v3933_v16, 0.0  ;;  %v810_v9 = vadd.f32 (!%p3108_p11), %v809_v50, %v808_v54  ;;  %v893_v0 = vadd.f32 (!%p3108_p11), %v892_v11, %v891_v12 }
  0x3d   : > { %v868_v8 = vsel %vm791_vm2, %v843_v46, 0.0  ;;  %v861_v16 = vadd.f32 %v860_v4, %v859_v7  ;;  %v872_v50 = vsel %vm791_vm2, %v845_v55, 0.0  ;;  %v876_v11 = vsel %vm791_vm2, %v847_v57, 0.0 }
  0x3e   : > { %v812_v2 = vadd.f32 %v811_v51, %v810_v9  ;;  %v895_v15 = vadd.f32 %v894_v13, %v893_v0  ;;  %v898_v12 = vsel %vm791_vm2, %v3951_v22, 0.0  ;;  %v4130_v46 = vsel %vm791_vm2, %v848_v56, 0.0 }
  0x3f   : > { %v863_v3 = vadd.f32 %v862_v63, %v861_v16  ;;  %v900_v7 = vsel %vm791_vm2, %v3954_v23, 0.0  ;;  %v902_v9 = vsel %vm791_vm2, %v3957_v24, 0.0  ;;  %v929_v13 = vmul.f32 %v3936_v17, %v3936_v17 }
  0x40   : > { %v814_v5 = vadd.f32 %v813_v52, %v812_v2  ;;  %v897_v60 = vadd.f32 %v896_v10, %v895_v15  ;;  %v930_v51 = vmul.f32 %v3939_v18, %v3939_v18  ;;  %v904_v16 = vsel %vm791_vm2, %v3960_v25, 0.0 }
  0x41   : > { %v865_v55 = vadd.f32 %v864_v14, %v863_v3  ;;  %v906_v15 = vsel %vm791_vm2, %v3963_v26, 0.0  ;;  %v908_v54 = vsel %vm791_vm2, %v3966_v27, 0.0  ;;  %v931_v62 = vmul.f32 %v3942_v19, %v3942_v19 }
  0x42   : > { %v816_v61 = vadd.f32 %v815_v53, %v814_v5  ;;  %v899_v52 = vadd.f32 %v898_v12, %v897_v60  ;;  %v932_v59 = vmul.f32 %v3945_v20, %v3945_v20  ;;  %v910_v56 = vsel %vm791_vm2, %v3969_v28, 0.0 }
  0x43   : > { %v867_v53 = vadd.f32 %v866_v6, %v865_v55  ;;  %v912_v4 = vsel %vm791_vm2, %v3972_v29, 0.0  ;;  %v933_v63 = vmul.f32 %v3948_v21, %v3948_v21  ;;  %v945_v0 = vsel %vm791_vm2, %v929_v13, 0.0 }
  0x44   : > { %v818_v57 = vadd.f32 %v4072_v58, %v816_v61  ;;  %v901_v14 = vadd.f32 %v900_v7, %v899_v52  ;;  %v946_v10 = vsel %vm791_vm2, %v930_v51, 0.0  ;;  %v914_v6 = vsel %vm791_vm2, %v3975_v30, 0.0 }
  0x45   : > { %v869_v12 = vadd.f32 %v868_v8, %v867_v53  ;;  %v947_v58 = vadd.f32 %v946_v10, %v945_v0  ;;  %v934_v3 = vmul.f32 %v3951_v22, %v3951_v22  ;;  %v948_v60 = vsel %vm791_vm2, %v931_v62, 0.0 }
  0x46   : > { %v820_v2 = vadd.f32 %v4077_v48, %v818_v57  ;;  %v903_v5 = vadd.f32 %v902_v9, %v901_v14  ;;  %v950_v7 = vsel %vm791_vm2, %v932_v59, 0.0  ;;  %v916_v48 = vsel %vm791_vm2, %v3978_v31, 0.0 }
  0x47   : > { %v871_v13 = vadd.f32 %v870_v49, %v869_v12  ;;  %v949_v51 = vadd.f32 %v948_v60, %v947_v58  ;;  %v918_v8 = vsel %vm791_vm2, %v3981_v32, 0.0  ;;  %v935_v9 = vmul.f32 %v3954_v23, %v3954_v23 }
  0x48   : > { %v822_v61 = vadd.f32 %v4081_v47, %v820_v2  ;;  %v905_v55 = vadd.f32 %v904_v16, %v903_v5  ;;  %v952_v52 = vsel %vm791_vm2, %v933_v63, 0.0  ;;  %v936_v47 = vmul.f32 %v3957_v24, %v3957_v24 }
  0x49   : > { %v873_v62 = vadd.f32 %v872_v50, %v871_v13  ;;  %v951_v59 = vadd.f32 %v950_v7, %v949_v51  ;;  %v937_v49 = vmul.f32 %v3960_v25, %v3960_v25  ;;  %v938_v16 = vmul.f32 %v3963_v26, %v3963_v26 }
  0x4a   : > { %v823_v57 = vrot.slane %v822_v61, 4  ;;  %v907_v53 = vadd.f32 %v906_v15, %v905_v55  ;;  %v954_v14 = vsel %vm791_vm2, %v934_v3, 0.0  ;;  %v939_v50 = vmul.f32 %v3966_v27, %v3966_v27 }
  0x4b   : > { %v875_v10 = vadd.f32 %v874_v1, %v873_v62  ;;  %v953_v12 = vadd.f32 %v952_v52, %v951_v59  ;;  %v956_v15 = vsel %vm791_vm2, %v935_v9, 0.0  ;;  %v985_v63 = vsel %vm791_vm2, %v3984_v33, 0.0 }
  0x4c   : > { %v824_v0 = vadd.f32 %v823_v57, %v822_v61  ;;  %v909_v2 = vadd.f32 %v908_v54, %v907_v53  ;;  %v986_v5 = vsel %vm791_vm2, %v3987_v34, 0.0  ;;  %v958_v1 = vsel %vm791_vm2, %v936_v47, 0.0 }
  0x4d   : > { %v877_v60 = vadd.f32 %v876_v11, %v875_v10  ;;  %v955_v3 = vadd.f32 %v954_v14, %v953_v12  ;;  %v987_v54 = vadd.f32 %v986_v5, %v985_v63  ;;  %v988_v61 = vsel %vm791_vm2, %v3990_v35, 0.0  ;;  %v790_v10 = vld [vmem:[#allocation2] sm:$0x1] }
  0x4e   : > { %v825_v58 = vrot.slane %v824_v0, 2  ;;  %v911_v7 = vadd.f32 %v910_v56, %v909_v2  ;;  %v990_v13 = vsel %vm791_vm2, %v3993_v36, 0.0  ;;  %v940_v57 = vmul.f32 %v3969_v28, %v3969_v28 }
  0x4f   : > { %v879_v51 = vadd.f32 %v4130_v46, %v877_v60  ;;  %v957_v52 = vadd.f32 %v956_v15, %v955_v3  ;;  %v960_v11 = vsel %vm791_vm2, %v937_v49, 0.0  ;;  %v989_v56 = vadd.f32 %v988_v61, %v987_v54 }
  0x50   : > { %v826_v55 = vadd.f32 %v825_v58, %v824_v0  ;;  %v913_v9 = vadd.f32 %v912_v4, %v911_v7  ;;  %v992_v62 = vsel %vm791_vm2, %v3996_v37, 0.0  ;;  %v941_v0 = vmul.f32 %v3972_v29, %v3972_v29 }
  0x51   : > { %v880_v59 = vrot.slane %v879_v51, 4  ;;  %v959_v14 = vadd.f32 %v958_v1, %v957_v52  ;;  %v962_v46 = vsel %vm791_vm2, %v938_v16, 0.0  ;;  %v991_v4 = vadd.f32 %v990_v13, %v989_v56 }
  0x52   : > { %v827_v53 = vrot.slane %v826_v55, 1  ;;  %v915_v47 = vadd.f32 %v914_v6, %v913_v9  ;;  %v994_v2 = vsel %vm791_vm2, %v3999_v38, 0.0  ;;  %v942_v5 = vmul.f32 %v3975_v30, %v3975_v30 }
  0x53   : > { %v881_v49 = vadd.f32 %v880_v59, %v879_v51  ;;  %v961_v63 = vadd.f32 %v960_v11, %v959_v14  ;;  %v964_v6 = vsel %vm791_vm2, %v939_v50, 0.0  ;;  %v993_v58 = vadd.f32 %v992_v62, %v991_v4  ;;  %v832_v59 = vld [vmem:[#allocation2 + $0x1] sm:$0x1] }
  0x54   : > { %v828_v12 = vadd.f32 %v827_v53, %v826_v55  ;;  %v917_v15 = vadd.f32 %v916_v48, %v915_v47  ;;  %v996_v60 = vsel %vm791_vm2, %v4002_v39, 0.0  ;;  %v943_v54 = vmul.f32 %v3978_v31, %v3978_v31 }
  0x55   : > { %v882_v3 = vrot.slane %v881_v49, 2  ;;  %v963_v1 = vadd.f32 %v962_v46, %v961_v63  ;;  %v966_v61 = vsel %vm791_vm2, %v940_v57, 0.0  ;;  %v995_v48 = vadd.f32 %v994_v2, %v993_v58 }
  0x56   : > { %v829_v7 = vadd.f32 %v828_v12, %v790_v10  ;;  %v919_v16 = vadd.f32 %v918_v8, %v917_v15  ;;  %v998_v50 = vsel %vm791_vm2, %v4005_v40, 0.0  ;;  %v944_v9 = vmul.f32 %v3981_v32, %v3981_v32 }
  0x57   : > { %v883_v13 = vadd.f32 %v882_v3, %v881_v49  ;;  %v965_v51 = vadd.f32 %v964_v6, %v963_v1  ;;  %v968_v8 = vsel %vm791_vm2, %v941_v0, 0.0  ;;  %v970_v52 = vsel %vm791_vm2, %v942_v5, 0.0 }
  0x58   : > { %831 = vst.msk [vmem:[#allocation2] sm:$0x1] %vm830_vm3, %v829_v7  ;;  %v920_v55 = vrot.slane %v919_v16, 4  ;;  %v997_v11 = vadd.f32 %v996_v60, %v995_v48  ;;  %v1000_v53 = vsel %vm791_vm2, %v4008_v41, 0.0  ;;  %v1002_v14 = vsel %vm791_vm2, %v4011_v42, 0.0 }
  0x59   : > { %v884_v56 = vrot.slane %v883_v13, 1  ;;  %v967_v57 = vadd.f32 %v966_v61, %v965_v51  ;;  %v1025_v10 = vmul.f32 %v3984_v33, %v3984_v33  ;;  %v1026_v0 = vmul.f32 %v3987_v34, %v3987_v34  ;;  %v888_v51 = vld [vmem:[#allocation3] sm:$0x1] }
  0x5a   : > { %v921_v62 = vadd.f32 %v920_v55, %v919_v16  ;;  %v999_v47 = vadd.f32 %v998_v50, %v997_v11  ;;  %v1027_v12 = vmul.f32 %v3990_v35, %v3990_v35  ;;  %v972_v49 = vsel %vm791_vm2, %v943_v54, 0.0 }
  0x5b   : > { %v885_v46 = vadd.f32 %v884_v56, %v883_v13  ;;  %v969_v2 = vadd.f32 %v968_v8, %v967_v57  ;;  %v974_v15 = vsel %vm791_vm2, %v944_v9, 0.0  ;;  %v1004_v5 = vsel %vm791_vm2, %v4014_v43, 0.0 }
  0x5c   : > { %v922_v4 = vrot.slane %v921_v62, 2  ;;  %v1001_v63 = vadd.f32 %v1000_v53, %v999_v47  ;;  %v1028_v7 = vmul.f32 %v3993_v36, %v3993_v36  ;;  %v1006_v16 = vsel %vm791_vm2, %v4017_v44, 0.0  ;;  %v5025_v53 = vld [vmem:[#allocation36_spill] sm:$0xff] }
  0x5d   : > { %v886_v6 = vadd.f32 %v885_v46, %v832_v59  ;;  %v971_v60 = vadd.f32 %v970_v52, %v969_v2  ;;  %v1029_v1 = vmul.f32 %v3996_v37, %v3996_v37  ;;  %v1041_v54 = vsel %vm791_vm2, %v1025_v10, 0.0 }
  0x5e   : > { %v923_v58 = vadd.f32 %v922_v4, %v921_v62  ;;  %v1003_v3 = vadd.f32 %v1002_v14, %v1001_v63  ;;  %v1042_v13 = vsel %vm791_vm2, %v1026_v0, 0.0  ;;  %v1044_v55 = vsel %vm791_vm2, %v1027_v12, 0.0 }
  0x5f   : > { %887 = vst.msk [vmem:[#allocation2 + $0x1] sm:$0x1] %vm830_vm3, %v886_v6  ;;  %v973_v48 = vadd.f32 %v972_v49, %v971_v60  ;;  %v1008_v9 = vsel %vm791_vm2, %v4020_v45, 0.0  ;;  %v1043_v8 = vadd.f32 %v1042_v13, %v1041_v54  ;;  %v1030_v56 = vmul.f32 %v3999_v38, %v3999_v38  ;;  %v5026_v49 = vld [vmem:[#allocation37_spill] sm:$0xff] }
  0x60   : > { %v924_v61 = vrot.slane %v923_v58, 1  ;;  %v1005_v50 = vadd.f32 %v1004_v5, %v1003_v3  ;;  %v1046_v62 = vsel %vm791_vm2, %v1028_v7, 0.0  ;;  %v1010_v59 = vsel %vm791_vm2, %v5025_v53, 0.0  ;;  %v5027_v7 = vld [vmem:[#allocation38_spill] sm:$0xff] }
  0x61   : > { %v975_v11 = vadd.f32 %v974_v15, %v973_v48  ;;  %v1045_v47 = vadd.f32 %v1044_v55, %v1043_v8  ;;  %v1031_v0 = vmul.f32 %v4002_v39, %v4002_v39  ;;  %v1048_v46 = vsel %vm791_vm2, %v1029_v1, 0.0 }
  0x62   : > { %v925_v52 = vadd.f32 %v924_v61, %v923_v58  ;;  %v1007_v57 = vadd.f32 %v1006_v16, %v1005_v50  ;;  %v1012_v15 = vsel %vm791_vm2, %v5026_v49, 0.0  ;;  %v1032_v63 = vmul.f32 %v4005_v40, %v4005_v40 }
  0x63   : > { %v976_v10 = vrot.slane %v975_v11, 4  ;;  %v1047_v2 = vadd.f32 %v1046_v62, %v1045_v47  ;;  %v1050_v5 = vsel %vm791_vm2, %v1030_v56, 0.0  ;;  %v1014_v3 = vsel %vm791_vm2, %v5027_v7, 0.0 }
  0x64   : > { %v926_v14 = vadd.f32 %v925_v52, %v888_v51  ;;  %v1009_v4 = vadd.f32 %v1008_v9, %v1007_v57  ;;  %v1033_v16 = vmul.f32 %v4008_v41, %v4008_v41  ;;  %v1052_v1 = vsel %vm791_vm2, %v1031_v0, 0.0 }
  0x65   : > { %v977_v12 = vadd.f32 %v976_v10, %v975_v11  ;;  %v1049_v58 = vadd.f32 %v1048_v46, %v1047_v2  ;;  %v1034_v13 = vmul.f32 %v4011_v42, %v4011_v42  ;;  %v1054_v55 = vsel %vm791_vm2, %v1032_v63, 0.0  ;;  %v928_v11 = vld [vmem:[#allocation3 + $0x1] sm:$0x1] }
  0x66   : > { %927 = vst.msk [vmem:[#allocation3] sm:$0x1] %vm830_vm3, %v926_v14  ;;  %v1011_v6 = vadd.f32 %v1010_v59, %v1009_v4  ;;  %v1035_v8 = vmul.f32 %v4014_v43, %v4014_v43  ;;  %v1056_v52 = vsel %vm791_vm2, %v1033_v16, 0.0  ;;  %v1036_v59 = vmul.f32 %v4017_v44, %v4017_v44 }
  0x67   : > { %v978_v60 = vrot.slane %v977_v12, 2  ;;  %v1051_v61 = vadd.f32 %v1050_v5, %v1049_v58  ;;  %v1058_v47 = vsel %vm791_vm2, %v1034_v13, 0.0  ;;  %v1037_v46 = vmul.f32 %v4020_v45, %v4020_v45 }
  0x68   : > { %v1013_v54 = vadd.f32 %v1012_v15, %v1011_v6  ;;  %v1060_v4 = vsel %vm791_vm2, %v1035_v8, 0.0  ;;  %v1038_v15 = vmul.f32 %v5025_v53, %v5025_v53  ;;  %v1062_v63 = vsel %vm791_vm2, %v1036_v59, 0.0 }
  0x69   : > { %v979_v48 = vadd.f32 %v978_v60, %v977_v12  ;;  %v1053_v50 = vadd.f32 %v1052_v1, %v1051_v61  ;;  %v1039_v58 = vmul.f32 %v5026_v49, %v5026_v49  ;;  %v1064_v60 = vsel %vm791_vm2, %v1037_v46, 0.0  ;;  %v984_v1 = vld [vmem:[#allocation4] sm:$0x1] }
  0x6a   : > { %v1015_v51 = vadd.f32 %v1014_v3, %v1013_v54  ;;  %v1040_v54 = vmul.f32 %v5027_v7, %v5027_v7  ;;  %v1066_v61 = vsel %vm791_vm2, %v1038_v15, 0.0  ;;  %v1024_v7 = vld [vmem:[#allocation4 + $0x1] sm:$0x1] }
  0x6b   : > { %v980_v9 = vrot.slane %v979_v48, 1  ;;  %v1055_v62 = vadd.f32 %v1054_v55, %v1053_v50  ;;  %v1068_v53 = vsel %vm791_vm2, %v1039_v58, 0.0 }
  0x6c   : > { %v1016_v56 = vrot.slane %v1015_v51, 4  ;;  %v1070_v50 = vsel %vm791_vm2, %v1040_v54, 0.0 }
  0x6d   : > { %v981_v57 = vadd.f32 %v980_v9, %v979_v48  ;;  %v1057_v10 = vadd.f32 %v1056_v52, %v1055_v62 }
  0x6e   : > { %v1017_v14 = vadd.f32 %v1016_v56, %v1015_v51 }
  0x6f   : > { %v982_v0 = vadd.f32 %v981_v57, %v928_v11  ;;  %v1059_v12 = vadd.f32 %v1058_v47, %v1057_v10 }
  0x70   : > { %v1018_v2 = vrot.slane %v1017_v14, 2 }
  0x71   : > { %983 = vst.msk [vmem:[#allocation3 + $0x1] sm:$0x1] %vm830_vm3, %v982_v0  ;;  %v1061_v6 = vadd.f32 %v1060_v4, %v1059_v12 }
  0x72   : > { %v1019_v5 = vadd.f32 %v1018_v2, %v1017_v14 }
  0x73   : > { %v1063_v16 = vadd.f32 %v1062_v63, %v1061_v6 }
  0x74   : > { %v1020_v3 = vrot.slane %v1019_v5, 1 }
  0x75   : > { %v1065_v13 = vadd.f32 %v1064_v60, %v1063_v16 }
  0x76   : > { %v1021_v48 = vadd.f32 %v1020_v3, %v1019_v5 }
  0x77   : > { %v1067_v51 = vadd.f32 %v1066_v61, %v1065_v13 }
  0x78   : > { %v1022_v55 = vadd.f32 %v1021_v48, %v984_v1 }
  0x79   : > { %v1069_v49 = vadd.f32 %v1068_v53, %v1067_v51 }
  0x7a   : > { %1023 = vst.msk [vmem:[#allocation4] sm:$0x1] %vm830_vm3, %v1022_v55 }
  0x7b   : > { %v1071_v9 = vadd.f32 %v1070_v50, %v1069_v49 }
  0x7d   : > { %v1072_v8 = vrot.slane %v1071_v9, 4 }
  0x7f   : > { %v1073_v52 = vadd.f32 %v1072_v8, %v1071_v9 }
  0x81   : > { %v1074_v11 = vrot.slane %v1073_v52, 2 }
  0x83   : > { %v1075_v56 = vadd.f32 %v1074_v11, %v1073_v52 }
  0x85   : > { %v1076_v62 = vrot.slane %v1075_v56, 1 }
  0x87   : > { %v1077_v57 = vadd.f32 %v1076_v62, %v1075_v56 }
  0x89   : > { %v1078_v59 = vadd.f32 %v1077_v57, %v1024_v7 }
  0x8b   : > { %1079 = vst.msk [vmem:[#allocation4 + $0x1] sm:$0x1] %vm830_vm3, %v1078_v59 }
  0x8c PF: > { %p1080_p12 = scmp.ge.s32.totalorder %s3692_s25, 1 }
  0x8e   : > { %p1081_p13 = pnand %p1080_p12, %p727_p8 }
  0x8f   : > { %v1130_v47 = vld [vmem:[%s4952_s10] sm:$0xff] (!%p1081_p13)  ;;  %v1131_v14 = vld [vmem:[%s4952_s10 + $0x8] sm:$0xff] (!%p1081_p13)  ;;  %v3707_v0 = vmov (!%p1081_p13), 0.0|0.0   ;;  %vm3708_vm4 = vmmov (!%p1081_p13), 0   ;;  %v3709_v12 = vmov (!%p1081_p13), 0.0   ;;  %s5028_s30 = sld [smem:[#allocation43_spill]] (!%p1081_p13) }
  0x90   : > { %1084 = sbr.rel (%p1081_p13) target bundleno = 810 (0x32a), region = 116  ;;  %v1128_v10 = vld [vmem:[%s4951_s9] sm:$0xff] (!%p1081_p13)  ;;  %3515 = vmatprep.subr.bf16.mxu0 (!%p1081_p13), %v3707_v0  ;;  %v3516_v46 = vpack.c.bf16 (!%p1081_p13), %v1131_v14, %v1130_v47  ;;  %3518 = vmatprep.subr.bf16.mxu1 (!%p1081_p13), %v3707_v0  ;;  %v1129_v4 = vld [vmem:[%s4951_s9 + $0x8] sm:$0xff] (!%p1081_p13)  ;;  %vm1124_vm5 = vcmask (!%p1081_p13), 122880   ;;  %s5029_s1 = sld [smem:[#allocation42_spill]] (!%p1081_p13)  ;;  %vm1132_vm6 = vcmask (!%p1081_p13), 130048  }
  0x91   : > { %v3519_v2 = vpack.c.bf16 (!%p1081_p13), %v1129_v4, %v1128_v10  ;;  %3328 = vmatprep.mubr.msk.f32.mxu0 (!%p1081_p13), %vm3708_vm4, %v3709_v12  ;;  %3335 = vmatprep.mubr.msk.f32.mxu1 (!%p1081_p13), %vm3708_vm4, %v3709_v12  ;;  %v1100_v15 = vld [vmem:[#allocation3] sm:$0x1] (!%p1081_p13)  ;;  %v1102_v63 = vld [vmem:[#allocation3 + $0x1] sm:$0x1] (!%p1081_p13)  ;;  %v1087_v58 = vld [vmem:[#allocation2] sm:$0x1] (!%p1081_p13) }
  0x92   : > { %3517 = vmatpush3.bf16.msra.mxu0 (!%p1081_p13), %v3516_v46  ;;  %v1101_v5 = vmul.f32 (!%p1081_p13), 0.001953125, %v1100_v15  ;;  %v1103_v6 = vmul.f32 (!%p1081_p13), 0.001953125, %v1102_v63  ;;  %v1089_v60 = vld [vmem:[#allocation2 + $0x1] sm:$0x1] (!%p1081_p13)  ;;  %v1088_v16 = vmul.f32 (!%p1081_p13), 0.001953125, %v1087_v58  ;;  %v1280_v59 = vld [vmem:[%s4953_s11 + $0x8] sm:$0xff] (!%p1081_p13) }
  0x93   : > { %3520 = vmatpush3.bf16.msra.mxu1 (!%p1081_p13), %v3519_v2  ;;  %3521 = vmatprep.subr.bf16.mxu0 (!%p1081_p13), %v3707_v0  ;;  %v1090_v1 = vmul.f32 (!%p1081_p13), 0.001953125, %v1089_v60  ;;  %v1113_v54 = vld [vmem:[#allocation4] sm:$0x1] (!%p1081_p13)  ;;  %v1115_v61 = vld [vmem:[#allocation4 + $0x1] sm:$0x1] (!%p1081_p13)  ;;  %s5030_s27 = sld [smem:[#allocation44_spill]] (!%p1081_p13) }
  0x94   : > { %v1104_v3 = vmul.f32 (!%p1081_p13), %v1101_v5, %v1101_v5  ;;  %v1091_v13 = vmul.f32 (!%p1081_p13), %v1088_v16, %v1088_v16  ;;  %v1114_v53 = vmul.f32 (!%p1081_p13), 0.001953125, %v1113_v54  ;;  %v1116_v55 = vmul.f32 (!%p1081_p13), 0.001953125, %v1115_v61  ;;  %v1279_v57 = vld [vmem:[%s4953_s11] sm:$0xff] (!%p1081_p13)  ;;  %p3112_p0 = scmp.lt.s32.totalorder (!%p1081_p13), %s3692_s25, 2 }
  0x95   : > { %v1098_v11 = vld [vmem:[%s5028_s30] sm:$0x1] (!%p1081_p13)  ;;  %v3522_v15 = vpack.c.bf16 (!%p1081_p13), %v1280_v59, %v1279_v57  ;;  %vm1357_vm7 = vcmask (!%p1081_p13), 253952  }
  0x96   : > { %v1105_v48 = vsub.f32 (!%p1081_p13), %v1103_v6, %v1104_v3  ;;  %v1092_v50 = vsub.f32 (!%p1081_p13), %v1090_v1, %v1091_v13  ;;  %v1117_v49 = vmul.f32 (!%p1081_p13), %v1114_v53, %v1114_v53  ;;  %v1085_v62 = vld [vmem:[%s5029_s1] sm:$0x1] (!%p1081_p13) }
  0x97   : > { %v1099_v14 = vld [vmem:[%s4949_s7] sm:$0x1]  ;;  %vm3711_vm8 = vmmov (!%p3112_p0), 0   ;;  %v1367_v57 = vld [vmem:[#allocation5 + $0x1] sm:$0x1] (!%p3112_p0)  ;;  %vm1382_vm9 = vcmask (!%p3112_p0), 261120  }
  0x98   : > { %v1106_v51 = vadd.f32 1e-05, %v1105_v48  ;;  %v1093_v9 = vadd.f32 1e-05, %v1092_v50  ;;  %v1118_v8 = vsub.f32 %v1116_v55, %v1117_v49  ;;  %v1086_v2 = vld [vmem:[%s4948_s6] sm:$0x1] }
  0x99   : > { %v1111_v10 = vld [vmem:[%s5030_s27] sm:$0x1]  ;;  %p3114_p1 = scmp.ne.s32.totalorder (!%p3112_p0), %s3692_s25, 3 }
  0x9a   : > { %3656 = vrsqrt.f32 %v1106_v51  ;;  %v1119_v52 = vadd.f32 1e-05, %v1118_v8  ;;  %v1112_v60 = vld [vmem:[%s4950_s8] sm:$0x1]  ;;  %v1379_v8 = vld [vmem:[%s4957_s15 + $0x10] sm:$0xff] (!%p3112_p0) }
  0x9b   : > { %3658 = vrsqrt.f32 %v1093_v9  ;;  %v1378_v9 = vld [vmem:[%s4957_s15 + $0x8] sm:$0xff] (!%p3112_p0) }
  0x9c   : > { %3660 = vrsqrt.f32 %v1119_v52  ;;  %v3710_v52 = vmov (!%p3112_p0), 0.0|0.0  }
  0xa4   : > { %v3657_v56 = vpop.eup %3656 }
  0xa5   : > { %v1108_v7 = vmul.f32 %v3657_v56, %v1098_v11  ;;  %v3659_v47 = vpop.eup %3658  ;;  %v1380_v56 = vld [vmem:[%s4957_s15 + $0x18] sm:$0xff] (!%p3112_p0) }
  0xa6   : > { %v1095_v46 = vmul.f32 %v3659_v47, %v1085_v62  ;;  %v3661_v4 = vpop.eup %3660  ;;  %v3712_v62 = vmov (!%p3112_p0), 0.0   ;;  %v3528_v59 = vpack.c.bf16 (!%p3112_p0), %v1380_v56, %v1379_v8 }
  0xa7   : > { %v1109_v0 = vmul.f32 %v1108_v7, %v1101_v5  ;;  %1126 = vst.msk [vmem:[#allocation8] sm:$0x1] %vm1124_vm5, %v1108_v7  ;;  %v1121_v58 = vmul.f32 %v3661_v4, %v1111_v10  ;;  %v1365_v7 = vld [vmem:[#allocation5] sm:$0x1] (!%p3112_p0)  ;;  %v1363_v4 = vld [vmem:[%s4955_s13] sm:$0x1] (!%p3112_p0) }
  0xa8   : > { %v1096_v6 = vmul.f32 %v1095_v46, %v1088_v16  ;;  %1125 = vst.msk [vmem:[#allocation7] sm:$0x1] %vm1124_vm5, %v1095_v46  ;;  %v1366_v47 = vmul.f32 (!%p3112_p0), 0.001953125, %v1365_v7 }
  0xa9   : > { %v1110_v63 = vsub.f32 %v1099_v14, %v1109_v0  ;;  %v1122_v3 = vmul.f32 %v1121_v58, %v1114_v53  ;;  %1127 = vst.msk [vmem:[#allocation9] sm:$0x1] %vm1124_vm5, %v1121_v58  ;;  %v1355_v53 = vld [vmem:[%s4954_s12] sm:$0x1]  ;;  %v1368_v14 = vmul.f32 (!%p3112_p0), 0.001953125, %v1367_v57 }
  0xaa   : > { %v1097_v5 = vsub.f32 %v1086_v2, %v1096_v6  ;;  %v1369_v10 = vmul.f32 (!%p3112_p0), %v1366_v47, %v1366_v47 }
  0xab   : > { %3329 = vmatmul.mubr.msk.f32.vlgmr.msra.gmra.mrb[0].mxu0 %vm1132_vm6, %v1110_v63  ;;  %v1123_v1 = vsub.f32 %v1112_v60, %v1122_v3  ;;  %v1364_v63 = vld [vmem:[%s4956_s14] sm:$0x1] (!%p3112_p0) }
  0xac   : > { %3523 = vmatpush3.bf16.msra.mxu0 %v3522_v15  ;;  %3342 = vmatprep.mubr.msk.f32.mxu0 %vm3708_vm4, %v3709_v12  ;;  %v1377_v12 = vld [vmem:[%s4957_s15] sm:$0xff] (!%p3112_p0)  ;;  %v1370_v0 = vsub.f32 (!%p3112_p0), %v1368_v14, %v1369_v10 }
  0xad   : > { %3336 = vmatmul.mubr.msk.f32.vlgmr.msra.gmra.mrb[0].mxu1 %vm1132_vm6, %v1097_v5  ;;  %3524 = vmatprep.subr.bf16.mxu0 (!%p3112_p0), %v3710_v52  ;;  %v3525_v11 = vpack.c.bf16 (!%p3112_p0), %v1378_v9, %v1377_v12  ;;  %v1381_v60 = vld [vmem:[%s4958_s16] sm:$0x1] (!%p3112_p0) }
  0xae   : > { %v1371_v46 = vadd.f32 (!%p3112_p0), 1e-05, %v1370_v0 }
  0xaf   : > { %3343 = vmatmul.mubr.msk.f32.vlgmr.msra.gmra.mrb[2].mxu0 %vm1132_vm6, %v1123_v1 }
  0xb0   : > { %3353 = vmatprep.mubr.msk.f32.mxu0 (!%p3112_p0), %vm3711_vm8, %v3712_v62  ;;  %3526 = vmatpush3.bf16.msra.mxu0 (!%p3112_p0), %v3525_v11  ;;  %3662 = vrsqrt.f32 (!%p3112_p0), %v1371_v46 }
  0xb1   : > { %3527 = vmatprep.subr.bf16.mxu0 (!%p3112_p0), %v3710_v52 }
  0xb4   : > { %3529 = vmatpush3.bf16.msra.mxu0 (!%p3112_p0), %v3528_v59 }
  0xba   : > { %v3663_v2 = vpop.eup (!%p3112_p0), %3662 }
  0xbb   : > { %v1373_v15 = vmul.f32 (!%p3112_p0), %v3663_v2, %v1363_v4 }
  0xbd   : > { %v1374_v6 = vmul.f32 (!%p3112_p0), %v1373_v15, %v1366_v47  ;;  %1376 = vst.msk [vmem:[#allocation11] sm:$0x1] (!%p3112_p0), %vm1357_vm7, %v1373_v15 }
  0xbf   : > { %v1375_v58 = vsub.f32 (!%p3112_p0), %v1364_v63, %v1374_v6 }
 0x17e   : > { %v1202_v16 = vpop.f32.mrb[0].mxu0 }
 0x17f   : > { %v3330_v54 = vpop.f32.mrb[1].mxu0  ;;  %3354 = vmatmul.mubr.msk.f32.vlgmr.msra.gmra.mrb[0].mxu0 (!%p3112_p0), %vm1382_vm9, %v1375_v58 }
 0x180   : > { %v1275_v61 = vpop.f32.mrb[0].mxu1 }
 0x181   : > { %v1276_v48 = vadd.f32 %v1275_v61, %v1202_v16  ;;  %v3337_v13 = vpop.f32.mrb[1].mxu1  ;;  %1362 = sbr.rel (%p3112_p0) target bundleno = 810 (0x32a), region = 120 }
 0x182   : > { %v1350_v55 = vpop.f32.mrb[2].mxu0 }
 0x183   : > { %v1354_v51 = vadd.f32 %v1350_v55, %v1276_v48  ;;  %v3344_v50 = vpop.f32.mrb[3].mxu0 }
 0x185   : > { %v1356_v49 = vadd.f32 %v1355_v53, %v1354_v51 }
 0x187   : > { %1358 = vst.msk [vmem:[#allocation10] sm:$0x1] %vm1357_vm7, %v1356_v49 }
 0x188   : > { %s5031_s5 = sld [smem:[#allocation47_spill]] (!%p3114_p1)  ;;  %v3713_v48 = vmov (!%p3114_p1), 0.0|0.0   ;;  %vm3714_vm10 = vmmov (!%p3114_p1), 0   ;;  %v3715_v53 = vmov (!%p3114_p1), 0.0   ;;  %v1463_v51 = vld [vmem:[#allocation6] sm:$0x1] (!%p3114_p1) }
 0x189   : > { %3530 = vmatprep.subr.bf16.mxu0 (!%p3114_p1), %v3713_v48  ;;  %3364 = vmatprep.mubr.msk.f32.mxu0 (!%p3114_p1), %vm3714_vm10, %v3715_v53  ;;  %v1465_v50 = vld [vmem:[#allocation6 + $0x1] sm:$0x1] (!%p3114_p1)  ;;  %v1464_v12 = vmul.f32 (!%p3114_p1), 0.001953125, %v1463_v51  ;;  %s5032_s20 = sld [smem:[#allocation45_spill]] (!%p3114_p1)  ;;  %s5033_s3 = sld [smem:[#allocation46_spill]] (!%p3114_p1) }
 0x18a   : > { %v1466_v9 = vmul.f32 (!%p3114_p1), 0.001953125, %v1465_v50  ;;  %s5034_s29 = sld [smem:[#allocation48_spill]] (!%p3114_p1) }
 0x18b   : > { %v1467_v8 = vmul.f32 (!%p3114_p1), %v1464_v12, %v1464_v12 }
 0x18d   : > { %v1468_v52 = vsub.f32 (!%p3114_p1), %v1466_v9, %v1467_v8 }
 0x18e   : > { %v1475_v16 = vld [vmem:[%s5031_s5] sm:$0xff] (!%p3114_p1)  ;;  %v1476_v54 = vld [vmem:[%s5031_s5 + $0x8] sm:$0xff] (!%p3114_p1)  ;;  %v1477_v61 = vld [vmem:[%s5031_s5 + $0x10] sm:$0xff] (!%p3114_p1) }
 0x18f   : > { %v3531_v13 = vpack.c.bf16 (!%p3114_p1), %v1476_v54, %v1475_v16  ;;  %v1478_v55 = vld [vmem:[%s5031_s5 + $0x18] sm:$0xff] (!%p3114_p1)  ;;  %v1469_v11 = vadd.f32 (!%p3114_p1), 1e-05, %v1468_v52  ;;  %v1461_v56 = vld [vmem:[%s5032_s20] sm:$0x1] (!%p3114_p1) }
 0x190   : > { %v3534_v49 = vpack.c.bf16 (!%p3114_p1), %v1478_v55, %v1477_v61  ;;  %v1462_v57 = vld [vmem:[%s5033_s3] sm:$0x1] (!%p3114_p1) }
 0x191   : > { %3532 = vmatpush3.bf16.msra.mxu0 (!%p3114_p1), %v3531_v13  ;;  %3664 = vrsqrt.f32 (!%p3114_p1), %v1469_v11  ;;  %v1479_v14 = vld [vmem:[%s5034_s29] sm:$0x1] (!%p3114_p1) }
 0x192   : > { %3533 = vmatprep.subr.bf16.mxu0 (!%p3114_p1), %v3713_v48 }
 0x195   : > { %3535 = vmatpush3.bf16.msra.mxu0 (!%p3114_p1), %v3534_v49 }
 0x19b   : > { %v3665_v62 = vpop.eup (!%p3114_p1), %3664 }
 0x19c   : > { %v1471_v7 = vmul.f32 (!%p3114_p1), %v3665_v62, %v1461_v56 }
 0x19e   : > { %v1472_v59 = vmul.f32 (!%p3114_p1), %v1471_v7, %v1464_v12  ;;  %1474 = vst.msk [vmem:[#allocation13] sm:$0x1] (!%p3114_p1), %vm1357_vm7, %v1471_v7 }
 0x1a0   : > { %v1473_v47 = vsub.f32 (!%p3114_p1), %v1462_v57, %v1472_v59 }
 0x24f   : > { %1460 = sbr.rel (%p3114_p1) target bundleno = 810 (0x32a), region = 124 }
 0x252   : > { %v1452_v5 = vpop.f32.mrb[0].mxu0 }
 0x253   : > { %v1453_v3 = vadd.f32 %v1452_v5, %v1381_v60  ;;  %v3355_v1 = vpop.f32.mrb[1].mxu0  ;;  %3365 = vmatmul.mubr.msk.f32.vlgmr.msra.gmra.mrb[0].mxu0 (!%p3114_p1), %vm1382_vm9, %v1473_v47 }
 0x255   : > { %1456 = vst.msk [vmem:[#allocation12] sm:$0x1] %vm1357_vm7, %v1453_v3 }
 0x326   : > { %v1549_v10 = vpop.f32.mrb[0].mxu0 }
 0x327   : > { %v1550_v0 = vadd.f32 %v1549_v10, %v1479_v14  ;;  %v3366_v46 = vpop.f32.mrb[1].mxu0 }
 0x329   : > { %1553 = vst.msk [vmem:[#allocation14] sm:$0x1] %vm1357_vm7, %v1550_v0 }
 0x32a PF: > { %p3116_p2 = scmp.lt.s32.totalorder %s3692_s25, 1 }
 0x32b   : > { %v1605_v4 = vld [vmem:[%s4952_s10] sm:$0xff] (!%p3116_p2)  ;;  %v1606_v2 = vld [vmem:[%s4952_s10 + $0x8] sm:$0xff] (!%p3116_p2)  ;;  %vm1607_vm11 = vcmask (!%p3116_p2), 130048   ;;  %v5035_v1 = vld [vmem:[#allocation20_spill] sm:$0xff] (!%p3116_p2)  ;;  %p3169_p3 = scmp.ne.s32.totalorder (!%p3116_p2), %s3692_s25, 1 }
 0x32c   : > { %1556 = sbr.rel (%p3116_p2) target bundleno = 1657 (0x679), region = 128  ;;  %v1580_v15 = vld [vmem:[%s4951_s9] sm:$0xff] (!%p3116_p2)  ;;  %v3536_v63 = vpack.c.bf16 (!%p3116_p2), %v1606_v2, %v1605_v4  ;;  %v1581_v6 = vld [vmem:[%s4951_s9 + $0x8] sm:$0xff] (!%p3116_p2)  ;;  %v5039_v9 = vld [vmem:[#allocation24_spill] sm:$0xff] (!%p3116_p2) }
 0x32d   : > { %v4405_v58 = vld [vmem:[#allocation8] ss:$0 sm:$0xff] (!%p3116_p2)  ;;  %v4407_v60 = vld [vmem:[#allocation7] ss:$0 sm:$0xff] (!%p3116_p2)  ;;  %v3540_v5 = vpack.c.bf16 (!%p3116_p2), %v1581_v6, %v1580_v15  ;;  %v2017_v54 = vld [vmem:[%s4953_s11] sm:$0xff] (!%p3116_p2) }
 0x32e   : > { %v1589_v3 = vmul.f32 (!%p3116_p2), %v4405_v58, %v3936_v17  ;;  %v1564_v16 = vmul.f32 (!%p3116_p2), %v4407_v60, %v5035_v1  ;;  %v2018_v61 = vld [vmem:[%s4953_s11 + $0x8] sm:$0xff] (!%p3116_p2)  ;;  %3537 = vmatprep.subr.bf16.mxu1 (!%p3116_p2), %v3536_v63  ;;  %v1590_v48 = vmul.f32 (!%p3116_p2), %v4405_v58, %v3939_v18  ;;  %v5036_v17 = vld [vmem:[#allocation21_spill] sm:$0xff] (!%p3116_p2)  ;;  %v1591_v53 = vmul.f32 (!%p3116_p2), %v4405_v58, %v3942_v19  ;;  %v5043_v10 = vld [vmem:[#allocation28_spill] sm:$0xff] (!%p3116_p2) }
 0x32f   : > { %v3544_v13 = vpack.c.bf16 (!%p3116_p2), %v2018_v61, %v2017_v54  ;;  %3541 = vmatprep.subr.bf16.mxu0 (!%p3116_p2), %v3540_v5  ;;  %3539 = vmatpush3.bf16.msra.mxu1 (!%p3116_p2), %v3536_v63  ;;  %v1565_v55 = vmul.f32 (!%p3116_p2), %v4407_v60, %v5036_v17  ;;  %v5037_v51 = vld [vmem:[#allocation22_spill] sm:$0xff] (!%p3116_p2)  ;;  %v1592_v18 = vmul.f32 (!%p3116_p2), %v4405_v58, %v3945_v20  ;;  %v5038_v49 = vld [vmem:[#allocation23_spill] sm:$0xff] (!%p3116_p2)  ;;  %v5040_v52 = vld [vmem:[#allocation25_spill] sm:$0xff] (!%p3116_p2) }
 0x330   : > { %3543 = vmatpush3.bf16.msra.mxu0 (!%p3116_p2), %v3540_v5  ;;  %3371 = vmatprep.mubr.msk.f32.mxu1 (!%p3116_p2), %vm1607_vm11, %v1589_v3  ;;  %v1566_v50 = vmul.f32 (!%p3116_p2), %v4407_v60, %v5037_v51  ;;  %v1567_v12 = vmul.f32 (!%p3116_p2), %v4407_v60, %v5038_v49  ;;  %v1593_v19 = vmul.f32 (!%p3116_p2), %v4405_v58, %v3948_v21  ;;  %v5041_v56 = vld [vmem:[#allocation26_spill] sm:$0xff] (!%p3116_p2)  ;;  %v4453_v7 = vld [vmem:[#allocation9] ss:$0 sm:$0xff] (!%p3116_p2)  ;;  %v5044_v0 = vld [vmem:[#allocation29_spill] sm:$0xff] (!%p3116_p2) }
 0x331   : > { %3399 = vmatprep.mubr.msk.f32.mxu0 (!%p3116_p2), %vm1607_vm11, %v1564_v16  ;;  %3564 = vmatprep.subr.bf16.mxu1 (!%p3116_p2), %v3540_v5  ;;  %v1568_v8 = vmul.f32 (!%p3116_p2), %v4407_v60, %v5039_v9  ;;  %v1594_v20 = vmul.f32 (!%p3116_p2), %v4405_v58, %v3951_v22  ;;  %v1569_v21 = vmul.f32 (!%p3116_p2), %v4407_v60, %v5040_v52  ;;  %v5042_v57 = vld [vmem:[#allocation27_spill] sm:$0xff] (!%p3116_p2)  ;;  %v5045_v46 = vld [vmem:[#allocation30_spill] sm:$0xff] (!%p3116_p2)  ;;  %v5047_v63 = vld [vmem:[#allocation32_spill] sm:$0xff] (!%p3116_p2) }
 0x332   : > { %3372 = vmatmul.mubr.msk.f32.vlgmr.msra.gmra.mrb[0].mxu1 (!%p3116_p2), %vm1607_vm11, %v1590_v48  ;;  %3545 = vmatprep.subr.bf16.mxu0 (!%p3116_p2), %v3544_v13  ;;  %v1595_v11 = vmul.f32 (!%p3116_p2), %v4405_v58, %v3954_v23  ;;  %v1570_v62 = vmul.f32 (!%p3116_p2), %v4407_v60, %v5041_v56  ;;  %v1596_v22 = vmul.f32 (!%p3116_p2), %v4405_v58, %v3957_v24  ;;  %v5046_v2 = vld [vmem:[#allocation31_spill] sm:$0xff] (!%p3116_p2)  ;;  %v5049_v3 = vld [vmem:[#allocation36_spill] sm:$0xff] (!%p3116_p2)  ;;  %v5050_v1 = vld [vmem:[#allocation34_spill] sm:$0xff] (!%p3116_p2) }
 0x333   : > { %3400 = vmatmul.mubr.msk.f32.vlgmr.msra.gmra.mrb[0].mxu0 %vm1607_vm11, %v1565_v55  ;;  %3565 = vmatpush3.bf16.msra.mxu1 %v3540_v5  ;;  %v1571_v59 = vmul.f32 %v4407_v60, %v5042_v57  ;;  %v1597_v23 = vmul.f32 %v4405_v58, %v3960_v25  ;;  %v2001_v47 = vmul.f32 %v4453_v7, %v3984_v33  ;;  %v5051_v54 = vld [vmem:[#allocation37_spill] sm:$0xff]  ;;  %v5052_v61 = vld [vmem:[#allocation35_spill] sm:$0xff]  ;;  %vm2288_vm12 = vcmask (!%p3169_p3), 261120  }
 0x334   : > { %3547 = vmatpush3.bf16.msra.mxu0 %v3544_v13  ;;  %3374 = vmatprep.mubr.msk.f32.mxu1 %vm1607_vm11, %v1591_v53  ;;  %v1598_v24 = vmul.f32 %v4405_v58, %v3963_v26  ;;  %v2002_v14 = vmul.f32 %v4453_v7, %v3987_v34  ;;  %v1599_v25 = vmul.f32 %v4405_v58, %v3966_v27  ;;  %v5053_v13 = vld [vmem:[#allocation38_spill] sm:$0xff]  ;;  %v4561_v9 = vld [vmem:[#allocation10] ss:$0 sm:$0xff]  ;;  %vm2327_vm13 = vcmask (!%p3169_p3), 253952  }
 0x335   : > { %3402 = vmatprep.mubr.msk.f32.mxu0 %vm1607_vm11, %v1566_v50  ;;  %v2003_v33 = vmul.f32 %v4453_v7, %v3990_v35  ;;  %v1600_v26 = vmul.f32 %v4405_v58, %v3969_v28  ;;  %v2004_v34 = vmul.f32 %v4453_v7, %v3993_v36  ;;  %v1601_v27 = vmul.f32 %v4405_v58, %v3972_v29 }
 0x336   : > { %3375 = vmatmul.mubr.msk.f32.gmra.mrb[2].mxu1 %vm1607_vm11, %v1592_v18  ;;  %v2005_v35 = vmul.f32 %v4453_v7, %v3996_v37  ;;  %v1602_v28 = vmul.f32 %v4405_v58, %v3975_v30  ;;  %v2006_v36 = vmul.f32 %v4453_v7, %v3999_v38  ;;  %v1603_v29 = vmul.f32 %v4405_v58, %v3978_v31 }
 0x337   : > { %3403 = vmatmul.mubr.msk.f32.gmra.mrb[2].mxu0 %vm1607_vm11, %v1567_v12  ;;  %3377 = vmatprep.mubr.msk.f32.mxu1 %vm1607_vm11, %v1593_v19  ;;  %v2007_v37 = vmul.f32 %v4453_v7, %v4002_v39  ;;  %v1604_v30 = vmul.f32 %v4405_v58, %v3981_v32  ;;  %v2008_v38 = vmul.f32 %v4453_v7, %v4005_v40  ;;  %v5048_v58 = vld [vmem:[#allocation33_spill] sm:$0xff] }
 0x338   : > { %3405 = vmatprep.mubr.msk.f32.mxu0 %vm1607_vm11, %v1568_v8  ;;  %v1572_v31 = vmul.f32 %v4407_v60, %v5043_v10  ;;  %v2009_v39 = vmul.f32 %v4453_v7, %v4008_v41  ;;  %v1573_v32 = vmul.f32 %v4407_v60, %v5044_v0  ;;  %v2010_v40 = vmul.f32 %v4453_v7, %v4011_v42 }
 0x339   : > { %v1574_v4 = vmul.f32 %v4407_v60, %v5045_v46  ;;  %v2011_v41 = vmul.f32 %v4453_v7, %v4014_v43  ;;  %v1575_v15 = vmul.f32 %v4407_v60, %v5046_v2  ;;  %v2012_v42 = vmul.f32 %v4453_v7, %v4017_v44 }
 0x33a   : > { %3378 = vmatmul.mubr.msk.f32.gmra.mrb[4].mxu1 %vm1607_vm11, %v1594_v20  ;;  %v1576_v6 = vmul.f32 %v4407_v60, %v5047_v63  ;;  %v2013_v43 = vmul.f32 %v4453_v7, %v4020_v45  ;;  %v1577_v5 = vmul.f32 %v4407_v60, %v5048_v58  ;;  %v2014_v44 = vmul.f32 %v4453_v7, %v5049_v3 }
 0x33b   : > { %3406 = vmatmul.mubr.msk.f32.gmra.mrb[4].mxu0 %vm1607_vm11, %v1569_v21  ;;  %3380 = vmatprep.mubr.msk.f32.mxu1 %vm1607_vm11, %v1595_v11  ;;  %v1578_v16 = vmul.f32 %v4407_v60, %v5050_v1  ;;  %v2015_v45 = vmul.f32 %v4453_v7, %v5051_v54  ;;  %v1579_v48 = vmul.f32 %v4407_v60, %v5052_v61 }
 0x33c   : > { %3408 = vmatprep.mubr.msk.f32.mxu0 %vm1607_vm11, %v1570_v62  ;;  %v2016_v17 = vmul.f32 %v4453_v7, %v5053_v13 }
 0x33e   : > { %3381 = vmatmul.mubr.msk.f32.gmra.mrb[6].mxu1 %vm1607_vm11, %v1596_v22 }
 0x33f   : > { %3409 = vmatmul.mubr.msk.f32.gmra.mrb[6].mxu0 %vm1607_vm11, %v1571_v59  ;;  %3383 = vmatprep.mubr.msk.f32.mxu1 %vm1607_vm11, %v1597_v23 }
 0x340   : > { %3427 = vmatprep.mubr.msk.f32.mxu0 %vm1607_vm11, %v2001_v47 }
 0x342   : > { %3384 = vmatmul.mubr.msk.f32.gmra.mrb[8].mxu1 %vm1607_vm11, %v1598_v24 }
 0x343   : > { %3428 = vmatmul.mubr.msk.f32.vlgmr.msra.gmra.mrb[0].mxu0 %vm1607_vm11, %v2002_v14  ;;  %3386 = vmatprep.mubr.msk.f32.mxu1 %vm1607_vm11, %v1599_v25 }
 0x344   : > { %3430 = vmatprep.mubr.msk.f32.mxu0 %vm1607_vm11, %v2003_v33 }
 0x346   : > { %3387 = vmatmul.mubr.msk.f32.gmra.mrb[10].mxu1 %vm1607_vm11, %v1600_v26 }
 0x347   : > { %3431 = vmatmul.mubr.msk.f32.gmra.mrb[2].mxu0 %vm1607_vm11, %v2004_v34  ;;  %3389 = vmatprep.mubr.msk.f32.mxu1 %vm1607_vm11, %v1601_v27 }
 0x348   : > { %3433 = vmatprep.mubr.msk.f32.mxu0 %vm1607_vm11, %v2005_v35 }
 0x34a   : > { %3390 = vmatmul.mubr.msk.f32.gmra.mrb[12].mxu1 %vm1607_vm11, %v1602_v28 }
 0x34b   : > { %3434 = vmatmul.mubr.msk.f32.gmra.mrb[4].mxu0 %vm1607_vm11, %v2006_v36  ;;  %3392 = vmatprep.mubr.msk.f32.mxu1 %vm1607_vm11, %v1603_v29 }
 0x34c   : > { %3436 = vmatprep.mubr.msk.f32.mxu0 %vm1607_vm11, %v2007_v37 }
 0x34e   : > { %3393 = vmatmul.mubr.msk.f32.gmra.mrb[14].mxu1 %vm1607_vm11, %v1604_v30 }
 0x34f   : > { %3437 = vmatmul.mubr.msk.f32.gmra.mrb[6].mxu0 %vm1607_vm11, %v2008_v38  ;;  %3411 = vmatprep.mubr.msk.f32.mxu1 %vm1607_vm11, %v1572_v31 }
 0x350   : > { %3439 = vmatprep.mubr.msk.f32.mxu0 %vm1607_vm11, %v2009_v39 }
 0x352   : > { %3412 = vmatmul.mubr.msk.f32.vlgmr.msra.gmra.mrb[8].mxu1 %vm1607_vm11, %v1573_v32 }
 0x353   : > { %3440 = vmatmul.mubr.msk.f32.gmra.mrb[8].mxu0 %vm1607_vm11, %v2010_v40  ;;  %3414 = vmatprep.mubr.msk.f32.mxu1 %vm1607_vm11, %v1574_v4 }
 0x354   : > { %3442 = vmatprep.mubr.msk.f32.mxu0 %vm1607_vm11, %v2011_v41 }
 0x356   : > { %3415 = vmatmul.mubr.msk.f32.gmra.mrb[10].mxu1 %vm1607_vm11, %v1575_v15 }
 0x357   : > { %3443 = vmatmul.mubr.msk.f32.gmra.mrb[10].mxu0 %vm1607_vm11, %v2012_v42  ;;  %3417 = vmatprep.mubr.msk.f32.mxu1 %vm1607_vm11, %v1576_v6 }
 0x358   : > { %3445 = vmatprep.mubr.msk.f32.mxu0 %vm1607_vm11, %v2013_v43 }
 0x35a   : > { %3418 = vmatmul.mubr.msk.f32.gmra.mrb[12].mxu1 %vm1607_vm11, %v1577_v5 }
 0x35b   : > { %3446 = vmatmul.mubr.msk.f32.gmra.mrb[12].mxu0 %vm1607_vm11, %v2014_v44  ;;  %3420 = vmatprep.mubr.msk.f32.mxu1 %vm1607_vm11, %v1578_v16 }
 0x35c   : > { %3448 = vmatprep.mubr.msk.f32.mxu0 %vm1607_vm11, %v2015_v45 }
 0x35e   : > { %3421 = vmatmul.mubr.msk.f32.gmra.mrb[14].mxu1 %vm1607_vm11, %v1579_v48 }
 0x35f   : > { %3449 = vmatmul.mubr.msk.f32.gmra.mrb[14].mxu0 %vm1607_vm11, %v2016_v17 }
 0x405   : > { %v3373_v55 = vpop.f32.mrb[0].mxu1 }
 0x406   : > { %v1722_v53 = vpop.f32.mrb[1].mxu1 }
 0x409   : > { %v3376_v51 = vpop.f32.mrb[2].mxu1 }
 0x40a   : > { %v1732_v50 = vpop.f32.mrb[3].mxu1 }
 0x40d   : > { %v3379_v18 = vpop.f32.mrb[4].mxu1 }
 0x40e   : > { %v1742_v49 = vpop.f32.mrb[5].mxu1 }
 0x411   : > { %v3382_v60 = vpop.f32.mrb[6].mxu1 }
 0x412   : > { %v1752_v12 = vpop.f32.mrb[7].mxu1 }
 0x416   : > { %v3429_v19 = vpop.f32.mrb[0].mxu0 }
 0x417   : > { %v3566_v8 = vadd.f32 %v3429_v19, %v3373_v55  ;;  %v2133_v20 = vpop.f32.mrb[1].mxu0 }
 0x418   : > { %v3567_v52 = vadd.f32 %v2133_v20, %v1722_v53 }
 0x419   : > { %v2236_v21 = vadd.f32 %v3566_v8, %v4561_v9 }
 0x41a   : > { %v2235_v11 = vadd.f32 %v3567_v52, %v4561_v9  ;;  %v3432_v56 = vpop.f32.mrb[2].mxu0 }
 0x41b   : > { %v2252_v62 = vmul.f32 0.1, %v2236_v21  ;;  %v3568_v7 = vadd.f32 %v3432_v56, %v3376_v51  ;;  %v2143_v22 = vpop.f32.mrb[3].mxu0 }
 0x41c   : > { %v2251_v57 = vmul.f32 0.1, %v2235_v11  ;;  %v3569_v59 = vadd.f32 %v2143_v22, %v1732_v50 }
 0x41d   : > { %v4565_v23 = vmax.f32 %v2236_v21, %v2252_v62  ;;  %v2238_v47 = vadd.f32 %v3568_v7, %v4561_v9 }
 0x41e   : > { %v4568_v24 = vmax.f32 %v2235_v11, %v2251_v57  ;;  %v2237_v14 = vadd.f32 %v3569_v59, %v4561_v9  ;;  %v3435_v25 = vpop.f32.mrb[4].mxu0 }
 0x41f   : > { %v2254_v33 = vmul.f32 0.1, %v2238_v47  ;;  %v3570_v26 = vadd.f32 %v3435_v25, %v3379_v18  ;;  %v2153_v34 = vpop.f32.mrb[5].mxu0 }
 0x420   : > { %v2253_v27 = vmul.f32 0.1, %v2237_v14  ;;  %v3571_v35 = vadd.f32 %v2153_v34, %v1742_v49 }
 0x421   : > { %v4571_v28 = vmax.f32 %v2238_v47, %v2254_v33  ;;  %v2240_v36 = vadd.f32 %v3570_v26, %v4561_v9 }
 0x422   : > { %v4574_v29 = vmax.f32 %v2237_v14, %v2253_v27  ;;  %v2239_v37 = vadd.f32 %v3571_v35, %v4561_v9  ;;  %v3438_v30 = vpop.f32.mrb[6].mxu0 }
 0x423   : > { %v2256_v38 = vmul.f32 0.1, %v2240_v36  ;;  %v3572_v10 = vadd.f32 %v3438_v30, %v3382_v60  ;;  %v2163_v31 = vpop.f32.mrb[7].mxu0 }
 0x424   : > { %v2255_v39 = vmul.f32 0.1, %v2239_v37  ;;  %v3573_v0 = vadd.f32 %v2163_v31, %v1752_v12  ;;  %v2289_v31 = vsel (!%p3169_p3), %vm2288_vm12, %v4568_v24, 0.0 }
 0x425   : > { %v4577_v32 = vmax.f32 %v2240_v36, %v2256_v38  ;;  %v2242_v40 = vadd.f32 %v3572_v10, %v4561_v9  ;;  %v3413_v46 = vpop.f32.mrb[8].mxu1 }
 0x426   : > { %v4580_v4 = vmax.f32 %v2239_v37, %v2255_v39  ;;  %v2241_v41 = vadd.f32 %v3573_v0, %v4561_v9  ;;  %v3441_v2 = vpop.f32.mrb[8].mxu0  ;;  %v1955_v15 = vpop.f32.mrb[9].mxu1  ;;  %v2290_v39 = vsel (!%p3169_p3), %vm2288_vm12, %v4565_v23, 0.0  ;;  %v2292_v0 = vsel (!%p3169_p3), %vm2288_vm12, %v4574_v29, 0.0 }
 0x427   : > { %v2258_v42 = vmul.f32 0.1, %v2242_v40  ;;  %v3574_v63 = vadd.f32 %v3441_v2, %v3413_v46  ;;  %v2173_v6 = vpop.f32.mrb[9].mxu0  ;;  %v2330_v2 = vmul.f32 (!%p3169_p3), %v4568_v24, %v4568_v24 }
 0x428   : > { %v2257_v43 = vmul.f32 0.1, %v2241_v41  ;;  %v3575_v58 = vadd.f32 %v2173_v6, %v1955_v15  ;;  %v2331_v15 = vmul.f32 (!%p3169_p3), %v4565_v23, %v4565_v23  ;;  %v2298_v6 = vsel (!%p3169_p3), %vm2288_vm12, %v4577_v32, 0.0 }
 0x429   : > { %v4583_v5 = vmax.f32 %v2242_v40, %v2258_v42  ;;  %v2244_v3 = vadd.f32 %v3574_v63, %v4561_v9  ;;  %v3416_v44 = vpop.f32.mrb[10].mxu1  ;;  %v2294_v40 = vsel (!%p3169_p3), %vm2288_vm12, %v4571_v28, 0.0  ;;  %v2332_v63 = vmul.f32 (!%p3169_p3), %v4574_v29, %v4574_v29 }
 0x42a   : > { %v4586_v1 = vmax.f32 %v2241_v41, %v2257_v43  ;;  %v2243_v16 = vadd.f32 %v3575_v58, %v4561_v9  ;;  %v3444_v54 = vpop.f32.mrb[10].mxu0  ;;  %v1965_v45 = vpop.f32.mrb[11].mxu1  ;;  %v2296_v41 = vsel (!%p3169_p3), %vm2288_vm12, %v4580_v4, 0.0  ;;  %v2333_v43 = vmul.f32 (!%p3169_p3), %v4571_v28, %v4571_v28 }
 0x42b   : > { %v2260_v61 = vmul.f32 0.1, %v2244_v3  ;;  %v3576_v48 = vadd.f32 %v3444_v54, %v3416_v44  ;;  %v2183_v13 = vpop.f32.mrb[11].mxu0  ;;  %v2334_v44 = vmul.f32 (!%p3169_p3), %v4580_v4, %v4580_v4  ;;  %v2347_v54 = vsel (!%p3169_p3), %vm2288_vm12, %v2331_v15, 0.0 }
 0x42c   : > { %v2259_v17 = vmul.f32 0.1, %v2243_v16  ;;  %v3577_v55 = vadd.f32 %v2183_v13, %v1965_v45  ;;  %v2302_v13 = vsel (!%p3169_p3), %vm2288_vm12, %v4583_v5, 0.0 }
 0x42d   : > { %v4589_v53 = vmax.f32 %v2244_v3, %v2260_v61  ;;  %v2246_v51 = vadd.f32 %v3576_v48, %v4561_v9  ;;  %v3419_v50 = vpop.f32.mrb[12].mxu1  ;;  %v2300_v3 = vsel (!%p3169_p3), %vm2288_vm12, %v4586_v1, 0.0  ;;  %v2349_v48 = vsel (!%p3169_p3), %vm2288_vm12, %v2332_v63, 0.0 }
 0x42e   : > { %v4592_v18 = vmax.f32 %v2243_v16, %v2259_v17  ;;  %v2245_v49 = vadd.f32 %v3577_v55, %v4561_v9  ;;  %v3447_v60 = vpop.f32.mrb[12].mxu0  ;;  %v1975_v12 = vpop.f32.mrb[13].mxu1  ;;  %v2346_v16 = vsel (!%p3169_p3), %vm2288_vm12, %v2330_v2, 0.0  ;;  %v2335_v17 = vmul.f32 (!%p3169_p3), %v4577_v32, %v4577_v32 }
 0x42f   : > { %v2262_v19 = vmul.f32 0.1, %v2246_v51  ;;  %v3578_v8 = vadd.f32 %v3447_v60, %v3419_v50  ;;  %v2193_v20 = vpop.f32.mrb[13].mxu0  ;;  %v2348_v61 = vadd.f32 (!%p3169_p3), %v2347_v54, %v2346_v16  ;;  %v2351_v55 = vsel (!%p3169_p3), %vm2288_vm12, %v2333_v43, 0.0 }
 0x430   : > { %v2261_v52 = vmul.f32 0.1, %v2245_v49  ;;  %v3579_v21 = vadd.f32 %v2193_v20, %v1975_v12  ;;  %v2336_v60 = vmul.f32 (!%p3169_p3), %v4586_v1, %v4586_v1  ;;  %v2353_v12 = vsel (!%p3169_p3), %vm2288_vm12, %v2334_v44, 0.0 }
 0x431   : > { %v4595_v11 = vmax.f32 %v2246_v51, %v2262_v19  ;;  %v2248_v56 = vadd.f32 %v3578_v8, %v4561_v9  ;;  %v3422_v62 = vpop.f32.mrb[14].mxu1  ;;  %v2350_v50 = vadd.f32 (!%p3169_p3), %v2349_v48, %v2348_v61  ;;  %v2306_v20 = vsel (!%p3169_p3), %vm2288_vm12, %v4589_v53, 0.0 }
 0x432   : > { %v4598_v7 = vmax.f32 %v2245_v49, %v2261_v52  ;;  %v2247_v22 = vadd.f32 %v3579_v21, %v4561_v9  ;;  %v3450_v57 = vpop.f32.mrb[14].mxu0  ;;  %v1985_v59 = vpop.f32.mrb[15].mxu1  ;;  %v2304_v49 = vsel (!%p3169_p3), %vm2288_vm12, %v4592_v18, 0.0  ;;  %v2337_v52 = vmul.f32 (!%p3169_p3), %v4583_v5, %v4583_v5 }
 0x433   : > { %v2264_v47 = vmul.f32 0.1, %v2248_v56  ;;  %v3580_v14 = vadd.f32 %v3450_v57, %v3422_v62  ;;  %v2203_v25 = vpop.f32.mrb[15].mxu0  ;;  %v2352_v8 = vadd.f32 (!%p3169_p3), %v2351_v55, %v2350_v50  ;;  %v2355_v21 = vsel (!%p3169_p3), %vm2288_vm12, %v2335_v17, 0.0 }
 0x434   : > { %v2263_v33 = vmul.f32 0.1, %v2247_v22  ;;  %v3581_v26 = vadd.f32 %v2203_v25, %v1985_v59  ;;  %2286 = sbr.rel (%p3169_p3) target bundleno = 1123 (0x463), region = 132  ;;  %v2338_v57 = vmul.f32 (!%p3169_p3), %v4592_v18, %v4592_v18  ;;  %v2357_v59 = vsel (!%p3169_p3), %vm2288_vm12, %v2336_v60, 0.0 }
 0x435   : > { %v4601_v34 = vmax.f32 %v2248_v56, %v2264_v47  ;;  %v2250_v27 = vadd.f32 %v3580_v14, %v4561_v9  ;;  %v2354_v62 = vadd.f32 (!%p3169_p3), %v2353_v12, %v2352_v8  ;;  %v2310_v25 = vsel (!%p3169_p3), %vm2288_vm12, %v4595_v11, 0.0 }
 0x436   : > { %v4604_v35 = vmax.f32 %v2247_v22, %v2263_v33  ;;  %v2249_v36 = vadd.f32 %v3581_v26, %v4561_v9  ;;  %v2291_v9 = vadd.f32 (!%p3169_p3), %v2290_v39, %v2289_v31  ;;  %v2308_v22 = vsel (!%p3169_p3), %vm2288_vm12, %v4598_v7, 0.0 }
 0x437   : > { %v2266_v37 = vmul.f32 0.1, %v2250_v27  ;;  %v2356_v14 = vadd.f32 (!%p3169_p3), %v2355_v21, %v2354_v62  ;;  %v2339_v33 = vmul.f32 (!%p3169_p3), %v4589_v53, %v4589_v53  ;;  %v2359_v26 = vsel (!%p3169_p3), %vm2288_vm12, %v2337_v52, 0.0 }
 0x438   : > { %v2265_v30 = vmul.f32 0.1, %v2249_v36  ;;  %v2293_v46 = vadd.f32 (!%p3169_p3), %v2292_v0, %v2291_v9  ;;  %v2361_v31 = vsel (!%p3169_p3), %vm2288_vm12, %v2338_v57, 0.0  ;;  %v2314_v9 = vsel (!%p3169_p3), %vm2288_vm12, %v4601_v34, 0.0 }
 0x439   : > { %v4607_v38 = vmax.f32 %v2250_v27, %v2266_v37  ;;  %v2312_v37 = vsel (!%p3169_p3), %vm2288_vm12, %v4604_v35, 0.0 }
 0x43a   : > { %v4609_v10 = vmax.f32 %v2249_v36, %v2265_v30  ;;  %v2295_v42 = vadd.f32 (!%p3169_p3), %v2294_v40, %v2293_v46  ;;  %v2358_v36 = vadd.f32 (!%p3169_p3), %v2357_v59, %v2356_v14  ;;  %v2340_v30 = vmul.f32 (!%p3169_p3), %v4598_v7, %v4598_v7 }
 0x43b   : > { %v2341_v40 = vmul.f32 %v4595_v11, %v4595_v11  ;;  %v2363_v46 = vsel %vm2288_vm12, %v2339_v33, 0.0  ;;  %v2345_v17 = vmul.f32 %v4607_v38, %v4607_v38 }
 0x43c   : > { %v2297_v58 = vadd.f32 %v2296_v41, %v2295_v42  ;;  %v2360_v0 = vadd.f32 %v2359_v26, %v2358_v36  ;;  %v2316_v15 = vsel %vm2288_vm12, %v4609_v10, 0.0  ;;  %v2342_v42 = vmul.f32 %v4604_v35, %v4604_v35  ;;  %v2329_v26 = vld [vmem:[#allocation5 + $0x1] sm:$0x1] }
 0x43d   : > { %v2365_v63 = vsel %vm2288_vm12, %v2340_v30, 0.0  ;;  %v2367_v44 = vsel %vm2288_vm12, %v2341_v40, 0.0 }
 0x43e   : > { %v2299_v45 = vadd.f32 %v2298_v6, %v2297_v58  ;;  %v2362_v2 = vadd.f32 %v2361_v31, %v2360_v0  ;;  %v2318_v58 = vsel %vm2288_vm12, %v4607_v38, 0.0  ;;  %v2369_v61 = vsel %vm2288_vm12, %v2342_v42, 0.0 }
 0x440   : > { %v2301_v51 = vadd.f32 %v2300_v3, %v2299_v45  ;;  %v2364_v43 = vadd.f32 %v2363_v46, %v2362_v2  ;;  %v2343_v3 = vmul.f32 %v4601_v34, %v4601_v34  ;;  %v2344_v45 = vmul.f32 %v4609_v10, %v4609_v10 }
 0x442   : > { %v2303_v19 = vadd.f32 %v2302_v13, %v2301_v51  ;;  %v2366_v54 = vadd.f32 %v2365_v63, %v2364_v43  ;;  %v2371_v55 = vsel %vm2288_vm12, %v2343_v3, 0.0 }
 0x444   : > { %v2305_v56 = vadd.f32 %v2304_v49, %v2303_v19  ;;  %v2368_v13 = vadd.f32 %v2367_v44, %v2366_v54  ;;  %v2373_v49 = vsel %vm2288_vm12, %v2344_v45, 0.0  ;;  %v2375_v19 = vsel %vm2288_vm12, %v2345_v17, 0.0 }
 0x446   : > { %v2307_v47 = vadd.f32 %v2306_v20, %v2305_v56  ;;  %v2370_v50 = vadd.f32 %v2369_v61, %v2368_v13 }
 0x448   : > { %v2309_v27 = vadd.f32 %v2308_v22, %v2307_v47  ;;  %v2372_v12 = vadd.f32 %v2371_v55, %v2370_v50  ;;  %v2287_v22 = vld [vmem:[#allocation5] sm:$0x1] }
 0x44a   : > { %v2311_v39 = vadd.f32 %v2310_v25, %v2309_v27  ;;  %v2374_v20 = vadd.f32 %v2373_v49, %v2372_v12 }
 0x44c   : > { %v2313_v41 = vadd.f32 %v2312_v37, %v2311_v39  ;;  %v2376_v21 = vadd.f32 %v2375_v19, %v2374_v20 }
 0x44e   : > { %v2315_v6 = vadd.f32 %v2314_v9, %v2313_v41  ;;  %v2377_v62 = vrot.slane %v2376_v21, 4 }
 0x450   : > { %v2317_v16 = vadd.f32 %v2316_v15, %v2315_v6  ;;  %v2378_v59 = vadd.f32 %v2377_v62, %v2376_v21 }
 0x452   : > { %v2319_v48 = vadd.f32 %v2318_v58, %v2317_v16  ;;  %v2379_v14 = vrot.slane %v2378_v59, 2 }
 0x454   : > { %v2320_v51 = vrot.slane %v2319_v48, 4  ;;  %v2380_v25 = vadd.f32 %v2379_v14, %v2378_v59 }
 0x456   : > { %v2321_v60 = vadd.f32 %v2320_v51, %v2319_v48  ;;  %v2381_v33 = vrot.slane %v2380_v25, 1 }
 0x458   : > { %v2322_v8 = vrot.slane %v2321_v60, 2  ;;  %v2382_v27 = vadd.f32 %v2381_v33, %v2380_v25 }
 0x45a   : > { %v2323_v52 = vadd.f32 %v2322_v8, %v2321_v60  ;;  %v2383_v36 = vadd.f32 %v2382_v27, %v2329_v26 }
 0x45c   : > { %v2324_v56 = vrot.slane %v2323_v52, 1  ;;  %2384 = vst.msk [vmem:[#allocation5 + $0x1] sm:$0x1] %vm2327_vm13, %v2383_v36 }
 0x45e   : > { %v2325_v57 = vadd.f32 %v2324_v56, %v2323_v52 }
 0x460   : > { %v2326_v47 = vadd.f32 %v2325_v57, %v2287_v22 }
 0x462   : > { %2328 = vst.msk [vmem:[#allocation5] sm:$0x1] %vm2327_vm13, %v2326_v47 }
 0x463 PF: > { %p3170_p4 = scmp.lt.s32.totalorder %s3692_s25, 2 }
 0x464   : > { %v2412_v37 = vld [vmem:[%s4957_s15] sm:$0xff] (!%p3170_p4)  ;;  %v2413_v30 = vld [vmem:[%s4957_s15 + $0x8] sm:$0xff] (!%p3170_p4)  ;;  %v2414_v31 = vld [vmem:[%s4957_s15 + $0x10] sm:$0xff] (!%p3170_p4)  ;;  %vm2423_vm14 = vcmask (!%p3170_p4), 261120   ;;  %p3189_p5 = scmp.ne.s32.totalorder (!%p3170_p4), %s3692_s25, 2 }
 0x465   : > { %2388 = sbr.rel (%p3170_p4) target bundleno = 1657 (0x679), region = 136  ;;  %v3548_v39 = vpack.c.bf16 (!%p3170_p4), %v2413_v30, %v2412_v37  ;;  %v2415_v0 = vld [vmem:[%s4957_s15 + $0x18] sm:$0xff] (!%p3170_p4)  ;;  %v3171_v9 = vld [vmem:[#allocation11] ss:$0 sm:$0xff] (!%p3170_p4) }
 0x466   : > { %v3552_v40 = vpack.c.bf16 (!%p3170_p4), %v2415_v0, %v2414_v31  ;;  %v2396_v46 = vmul.f32 (!%p3170_p4), %v3171_v9, %v4568_v24  ;;  %v2404_v41 = vmul.f32 (!%p3170_p4), %v3171_v9, %v4592_v18  ;;  %v2397_v2 = vmul.f32 (!%p3170_p4), %v3171_v9, %v4565_v23 }
 0x467   : > { %3549 = vmatprep.subr.bf16.mxu0 (!%p3170_p4), %v3548_v39  ;;  %3598 = vmatprep.subr.bf16.mxu1 (!%p3170_p4), %v3548_v39  ;;  %v2405_v15 = vmul.f32 (!%p3170_p4), %v3171_v9, %v4589_v53  ;;  %v2398_v24 = vmul.f32 (!%p3170_p4), %v3171_v9, %v4574_v29  ;;  %v2406_v18 = vmul.f32 (!%p3170_p4), %v3171_v9, %v4598_v7 }
 0x468   : > { %3551 = vmatpush3.bf16.msra.mxu0 (!%p3170_p4), %v3548_v39  ;;  %3600 = vmatpush3.bf16.msra.mxu1 (!%p3170_p4), %v3548_v39  ;;  %v2399_v42 = vmul.f32 (!%p3170_p4), %v3171_v9, %v4571_v28  ;;  %v2407_v63 = vmul.f32 (!%p3170_p4), %v3171_v9, %v4595_v11  ;;  %v2400_v23 = vmul.f32 (!%p3170_p4), %v3171_v9, %v4580_v4 }
 0x469   : > { %3553 = vmatprep.subr.bf16.mxu0 (!%p3170_p4), %v3552_v40  ;;  %3599 = vmatprep.subr.bf16.mxu1 (!%p3170_p4), %v3552_v40  ;;  %v2408_v53 = vmul.f32 (!%p3170_p4), %v3171_v9, %v4604_v35  ;;  %v2401_v29 = vmul.f32 (!%p3170_p4), %v3171_v9, %v4577_v32  ;;  %v2409_v7 = vmul.f32 (!%p3170_p4), %v3171_v9, %v4601_v34  ;;  %v3172_v32 = vld [vmem:[#allocation12] ss:$0 sm:$0xff] (!%p3170_p4) }
 0x46a   : > { %3459 = vmatprep.mubr.msk.f32.mxu0 (!%p3170_p4), %vm2423_vm14, %v2396_v46  ;;  %3471 = vmatprep.mubr.msk.f32.mxu1 (!%p3170_p4), %vm2423_vm14, %v2404_v41  ;;  %v2402_v28 = vmul.f32 (!%p3170_p4), %v3171_v9, %v4586_v1  ;;  %v2410_v11 = vmul.f32 (!%p3170_p4), %v3171_v9, %v4609_v10  ;;  %v2403_v4 = vmul.f32 (!%p3170_p4), %v3171_v9, %v4583_v5 }
 0x46b   : > { %v2411_v35 = vmul.f32 (!%p3170_p4), %v3171_v9, %v4607_v38 }
 0x46c   : > { %3555 = vmatpush3.bf16.msra.mxu0 %v3552_v40  ;;  %3601 = vmatpush3.bf16.msra.mxu1 %v3552_v40  ;;  %vm2692_vm15 = vcmask (!%p3189_p5), 253952  }
 0x46f   : > { %3460 = vmatmul.mubr.msk.f32.vlgmr.msra.gmra.mrb[0].mxu0 %vm2423_vm14, %v2397_v2  ;;  %3472 = vmatmul.mubr.msk.f32.vlgmr.msra.gmra.mrb[0].mxu1 %vm2423_vm14, %v2405_v15 }
 0x470   : > { %3462 = vmatprep.mubr.msk.f32.mxu0 %vm2423_vm14, %v2398_v24  ;;  %3474 = vmatprep.mubr.msk.f32.mxu1 %vm2423_vm14, %v2406_v18 }
 0x473   : > { %3463 = vmatmul.mubr.msk.f32.gmra.mrb[2].mxu0 %vm2423_vm14, %v2399_v42  ;;  %3475 = vmatmul.mubr.msk.f32.gmra.mrb[2].mxu1 %vm2423_vm14, %v2407_v63 }
 0x474   : > { %3465 = vmatprep.mubr.msk.f32.mxu0 %vm2423_vm14, %v2400_v23  ;;  %3477 = vmatprep.mubr.msk.f32.mxu1 %vm2423_vm14, %v2408_v53 }
 0x477   : > { %3466 = vmatmul.mubr.msk.f32.gmra.mrb[4].mxu0 %vm2423_vm14, %v2401_v29  ;;  %3478 = vmatmul.mubr.msk.f32.gmra.mrb[4].mxu1 %vm2423_vm14, %v2409_v7 }
 0x478   : > { %3468 = vmatprep.mubr.msk.f32.mxu0 %vm2423_vm14, %v2402_v28  ;;  %3480 = vmatprep.mubr.msk.f32.mxu1 %vm2423_vm14, %v2410_v11 }
 0x47b   : > { %3469 = vmatmul.mubr.msk.f32.gmra.mrb[6].mxu0 %vm2423_vm14, %v2403_v4  ;;  %3481 = vmatmul.mubr.msk.f32.gmra.mrb[6].mxu1 %vm2423_vm14, %v2411_v35 }
 0x542   : > { %v3461_v1 = vpop.f32.mrb[0].mxu0  ;;  %v3473_v34 = vpop.f32.mrb[0].mxu1 }
 0x543   : > { %v2544_v10 = vadd.f32 %v3461_v1, %v3172_v32  ;;  %v2584_v6 = vadd.f32 %v3473_v34, %v3172_v32  ;;  %v2538_v43 = vpop.f32.mrb[1].mxu0  ;;  %v2578_v58 = vpop.f32.mrb[1].mxu1 }
 0x544   : > { %v2539_v3 = vadd.f32 %v3172_v32, %v2538_v43  ;;  %v2579_v44 = vadd.f32 %v3172_v32, %v2578_v58 }
 0x545   : > { %v2618_v5 = vmul.f32 0.1, %v2544_v10  ;;  %v2626_v16 = vmul.f32 0.1, %v2584_v6 }
 0x546   : > { %v2617_v38 = vmul.f32 0.1, %v2539_v3  ;;  %v2625_v54 = vmul.f32 0.1, %v2579_v44  ;;  %v3464_v45 = vpop.f32.mrb[2].mxu0  ;;  %v3476_v61 = vpop.f32.mrb[2].mxu1 }
 0x547   : > { %v4737_v48 = vmax.f32 %v2544_v10, %v2618_v5  ;;  %v4739_v13 = vmax.f32 %v2584_v6, %v2626_v16  ;;  %v2554_v17 = vadd.f32 %v3464_v45, %v3172_v32  ;;  %v2594_v55 = vadd.f32 %v3476_v61, %v3172_v32  ;;  %v2548_v51 = vpop.f32.mrb[3].mxu0  ;;  %v2588_v50 = vpop.f32.mrb[3].mxu1 }
 0x548   : > { %v4741_v49 = vmax.f32 %v2539_v3, %v2617_v38  ;;  %v4743_v60 = vmax.f32 %v2579_v44, %v2625_v54  ;;  %v2549_v12 = vadd.f32 %v3172_v32, %v2548_v51  ;;  %v2589_v19 = vadd.f32 %v3172_v32, %v2588_v50 }
 0x549   : > { %v2620_v8 = vmul.f32 0.1, %v2554_v17  ;;  %v2628_v20 = vmul.f32 0.1, %v2594_v55  ;;  %v2696_v16 = vmul.f32 (!%p3189_p5), %v4737_v48, %v4737_v48 }
 0x54a   : > { %v2619_v52 = vmul.f32 0.1, %v2549_v12  ;;  %v2627_v21 = vmul.f32 0.1, %v2589_v19  ;;  %v3467_v56 = vpop.f32.mrb[4].mxu0  ;;  %v3479_v62 = vpop.f32.mrb[4].mxu1  ;;  %v2695_v5 = vmul.f32 (!%p3189_p5), %v4741_v49, %v4741_v49 }
 0x54b   : > { %v4745_v22 = vmax.f32 %v2554_v17, %v2620_v8  ;;  %v4747_v57 = vmax.f32 %v2594_v55, %v2628_v20  ;;  %v2564_v59 = vadd.f32 %v3467_v56, %v3172_v32  ;;  %v2604_v47 = vadd.f32 %v3479_v62, %v3172_v32  ;;  %v2558_v14 = vpop.f32.mrb[5].mxu0  ;;  %v2598_v25 = vpop.f32.mrb[5].mxu1 }
 0x54c   : > { %v4749_v33 = vmax.f32 %v2549_v12, %v2619_v52  ;;  %v4751_v26 = vmax.f32 %v2589_v19, %v2627_v21  ;;  %v2559_v27 = vadd.f32 %v3172_v32, %v2558_v14  ;;  %v2599_v36 = vadd.f32 %v3172_v32, %v2598_v25 }
 0x54d   : > { %v2622_v37 = vmul.f32 0.1, %v2564_v59  ;;  %v2630_v30 = vmul.f32 0.1, %v2604_v47  ;;  %v2654_v34 = vsel (!%p3189_p5), %vm2423_vm14, %v4741_v49, 0.0  ;;  %v2659_v43 = vsel (!%p3189_p5), %vm2423_vm14, %v4745_v22, 0.0 }
 0x54e   : > { %v2621_v31 = vmul.f32 0.1, %v2559_v27  ;;  %v2629_v39 = vmul.f32 0.1, %v2599_v36  ;;  %v3470_v0 = vpop.f32.mrb[6].mxu0  ;;  %v3482_v9 = vpop.f32.mrb[6].mxu1  ;;  %v2697_v54 = vmul.f32 (!%p3189_p5), %v4749_v33, %v4749_v33  ;;  %v2698_v61 = vmul.f32 (!%p3189_p5), %v4745_v22, %v4745_v22 }
 0x54f   : > { %v4753_v40 = vmax.f32 %v2564_v59, %v2622_v37  ;;  %v4755_v46 = vmax.f32 %v2604_v47, %v2630_v30  ;;  %v2574_v41 = vadd.f32 %v3470_v0, %v3172_v32  ;;  %v2614_v2 = vadd.f32 %v3482_v9, %v3172_v32  ;;  %v2568_v15 = vpop.f32.mrb[7].mxu0  ;;  %v2608_v24 = vpop.f32.mrb[7].mxu1  ;;  %2652 = sbr.rel (%p3189_p5) target bundleno = 1411 (0x583), region = 140 }
 0x550   : > { %v4757_v18 = vmax.f32 %v2559_v27, %v2621_v31  ;;  %v4759_v42 = vmax.f32 %v2599_v36, %v2629_v39  ;;  %v2569_v63 = vadd.f32 %v3172_v32, %v2568_v15  ;;  %v2609_v23 = vadd.f32 %v3172_v32, %v2608_v24 }
 0x551   : > { %v2624_v53 = vmul.f32 0.1, %v2574_v41  ;;  %v2632_v29 = vmul.f32 0.1, %v2614_v2  ;;  %v2655_v32 = vsel (!%p3189_p5), %vm2423_vm14, %v4737_v48, 0.0  ;;  %v2657_v10 = vsel (!%p3189_p5), %vm2423_vm14, %v4749_v33, 0.0 }
 0x552   : > { %v2623_v7 = vmul.f32 0.1, %v2569_v63  ;;  %v2631_v28 = vmul.f32 0.1, %v2609_v23  ;;  %v2656_v6 = vadd.f32 (!%p3189_p5), %v2655_v32, %v2654_v34  ;;  %v2661_v3 = vsel (!%p3189_p5), %vm2423_vm14, %v4757_v18, 0.0 }
 0x553   : > { %v4761_v11 = vmax.f32 %v2574_v41, %v2624_v53  ;;  %v4763_v4 = vmax.f32 %v2614_v2, %v2632_v29  ;;  %v2663_v38 = vsel (!%p3189_p5), %vm2423_vm14, %v4753_v40, 0.0  ;;  %v2699_v51 = vmul.f32 (!%p3189_p5), %v4757_v18, %v4757_v18 }
 0x554   : > { %v4765_v35 = vmax.f32 %v2569_v63, %v2623_v7  ;;  %v4767_v1 = vmax.f32 %v2609_v23, %v2631_v28  ;;  %v2658_v58 = vadd.f32 (!%p3189_p5), %v2657_v10, %v2656_v6  ;;  %v2711_v50 = vsel (!%p3189_p5), %vm2423_vm14, %v2695_v5, 0.0 }
 0x555   : > { %v2712_v12 = vsel (!%p3189_p5), %vm2423_vm14, %v2696_v16, 0.0  ;;  %v2667_v19 = vsel (!%p3189_p5), %vm2423_vm14, %v4761_v11, 0.0  ;;  %v2714_v20 = vsel (!%p3189_p5), %vm2423_vm14, %v2697_v54, 0.0  ;;  %v2700_v21 = vmul.f32 (!%p3189_p5), %v4753_v40, %v4753_v40 }
 0x556   : > { %v2660_v44 = vadd.f32 %v2659_v43, %v2658_v58  ;;  %v2665_v17 = vsel %vm2423_vm14, %v4765_v35, 0.0  ;;  %v2713_v8 = vadd.f32 %v2712_v12, %v2711_v50  ;;  %v2716_v56 = vsel %vm2423_vm14, %v2698_v61, 0.0 }
 0x557   : > { %v2669_v62 = vsel %vm2423_vm14, %v4743_v60, 0.0  ;;  %v2701_v14 = vmul.f32 %v4765_v35, %v4765_v35  ;;  %v2718_v25 = vsel %vm2423_vm14, %v2699_v51, 0.0  ;;  %v2671_v27 = vsel %vm2423_vm14, %v4739_v13, 0.0 }
 0x558   : > { %v2662_v45 = vadd.f32 %v2661_v3, %v2660_v44  ;;  %v2715_v59 = vadd.f32 %v2714_v20, %v2713_v8  ;;  %v2702_v30 = vmul.f32 %v4761_v11, %v4761_v11  ;;  %v2720_v31 = vsel %vm2423_vm14, %v2700_v21, 0.0 }
 0x559   : > { %v2673_v39 = vsel %vm2423_vm14, %v4751_v26, 0.0  ;;  %v2703_v41 = vmul.f32 %v4743_v60, %v4743_v60  ;;  %v2722_v2 = vsel %vm2423_vm14, %v2701_v14, 0.0  ;;  %v2675_v15 = vsel %vm2423_vm14, %v4747_v57, 0.0 }
 0x55a   : > { %v2664_v55 = vadd.f32 %v2663_v38, %v2662_v45  ;;  %v2717_v36 = vadd.f32 %v2716_v56, %v2715_v59  ;;  %v2704_v23 = vmul.f32 %v4739_v13, %v4739_v13  ;;  %v2724_v53 = vsel %vm2423_vm14, %v2702_v30, 0.0 }
 0x55b   : > { %v2677_v29 = vsel %vm2423_vm14, %v4759_v42, 0.0  ;;  %v2705_v34 = vmul.f32 %v4751_v26, %v4751_v26  ;;  %v2726_v32 = vsel %vm2423_vm14, %v2703_v41, 0.0  ;;  %v2679_v10 = vsel %vm2423_vm14, %v4755_v46, 0.0 }
 0x55c   : > { %v2666_v52 = vadd.f32 %v2665_v17, %v2664_v55  ;;  %v2719_v0 = vadd.f32 %v2718_v25, %v2717_v36  ;;  %v2706_v58 = vmul.f32 %v4747_v57, %v4747_v57  ;;  %v2728_v3 = vsel %vm2423_vm14, %v2704_v23, 0.0  ;;  %v2694_v23 = vld [vmem:[#allocation6 + $0x1] sm:$0x1] }
 0x55d   : > { %v2681_v44 = vsel %vm2423_vm14, %v4767_v1, 0.0  ;;  %v2707_v38 = vmul.f32 %v4759_v42, %v4759_v42  ;;  %v2730_v54 = vsel %vm2423_vm14, %v2705_v34, 0.0  ;;  %v2683_v45 = vsel %vm2423_vm14, %v4763_v4, 0.0 }
 0x55e   : > { %v2668_v47 = vadd.f32 %v2667_v19, %v2666_v52  ;;  %v2721_v24 = vadd.f32 %v2720_v31, %v2719_v0  ;;  %v2708_v55 = vmul.f32 %v4755_v46, %v4755_v46  ;;  %v2732_v51 = vsel %vm2423_vm14, %v2706_v58, 0.0 }
 0x55f   : > { %v2709_v19 = vmul.f32 %v4767_v1, %v4767_v1  ;;  %v2734_v8 = vsel %vm2423_vm14, %v2707_v38, 0.0  ;;  %v2710_v21 = vmul.f32 %v4763_v4, %v4763_v4 }
 0x560   : > { %v2670_v37 = vadd.f32 %v2669_v62, %v2668_v47  ;;  %v2723_v7 = vadd.f32 %v2722_v2, %v2721_v24  ;;  %v2736_v56 = vsel %vm2423_vm14, %v2708_v55, 0.0 }
 0x561   : > { %v2738_v47 = vsel %vm2423_vm14, %v2709_v19, 0.0 }
 0x562   : > { %v2672_v9 = vadd.f32 %v2671_v27, %v2670_v37  ;;  %v2725_v6 = vadd.f32 %v2724_v53, %v2723_v7  ;;  %v2740_v27 = vsel %vm2423_vm14, %v2710_v21, 0.0 }
 0x564   : > { %v2674_v63 = vadd.f32 %v2673_v39, %v2672_v9  ;;  %v2727_v5 = vadd.f32 %v2726_v32, %v2725_v6  ;;  %v2653_v39 = vld [vmem:[#allocation6] sm:$0x1] }
 0x566   : > { %v2676_v28 = vadd.f32 %v2675_v15, %v2674_v63  ;;  %v2729_v61 = vadd.f32 %v2728_v3, %v2727_v5 }
 0x568   : > { %v2678_v43 = vadd.f32 %v2677_v29, %v2676_v28  ;;  %v2731_v50 = vadd.f32 %v2730_v54, %v2729_v61 }
 0x56a   : > { %v2680_v16 = vadd.f32 %v2679_v10, %v2678_v43  ;;  %v2733_v20 = vadd.f32 %v2732_v51, %v2731_v50 }
 0x56c   : > { %v2682_v17 = vadd.f32 %v2681_v44, %v2680_v16  ;;  %v2735_v62 = vadd.f32 %v2734_v8, %v2733_v20 }
 0x56e   : > { %v2684_v12 = vadd.f32 %v2683_v45, %v2682_v17  ;;  %v2737_v14 = vadd.f32 %v2736_v56, %v2735_v62 }
 0x570   : > { %v2685_v52 = vrot.slane %v2684_v12, 4  ;;  %v2739_v36 = vadd.f32 %v2738_v47, %v2737_v14 }
 0x572   : > { %v2686_v59 = vadd.f32 %v2685_v52, %v2684_v12  ;;  %v2741_v30 = vadd.f32 %v2740_v27, %v2739_v36 }
 0x574   : > { %v2687_v25 = vrot.slane %v2686_v59, 2  ;;  %v2742_v0 = vrot.slane %v2741_v30, 4 }
 0x576   : > { %v2688_v37 = vadd.f32 %v2687_v25, %v2686_v59  ;;  %v2743_v41 = vadd.f32 %v2742_v0, %v2741_v30 }
 0x578   : > { %v2689_v31 = vrot.slane %v2688_v37, 1  ;;  %v2744_v15 = vrot.slane %v2743_v41, 2 }
 0x57a   : > { %v2690_v9 = vadd.f32 %v2689_v31, %v2688_v37  ;;  %v2745_v24 = vadd.f32 %v2744_v15, %v2743_v41 }
 0x57c   : > { %v2691_v2 = vadd.f32 %v2690_v9, %v2653_v39  ;;  %v2746_v63 = vrot.slane %v2745_v24, 1 }
 0x57e   : > { %2693 = vst.msk [vmem:[#allocation6] sm:$0x1] %vm2692_vm15, %v2691_v2  ;;  %v2747_v53 = vadd.f32 %v2746_v63, %v2745_v24 }
 0x580   : > { %v2748_v29 = vadd.f32 %v2747_v53, %v2694_v23 }
 0x582   : > { %2749 = vst.msk [vmem:[#allocation6 + $0x1] sm:$0x1] %vm2692_vm15, %v2748_v29 }
 0x583 PF: > { %p3190_p6 = scmp.ne.s32.totalorder %s3692_s25, 3 }
 0x584   : > { %s5054_s0 = sld [smem:[#allocation47_spill]] (!%p3190_p6)  ;;  %v3191_v6 = vld [vmem:[#allocation13] ss:$0 sm:$0xff] (!%p3190_p6) }
 0x585   : > { %2753 = sbr.rel (%p3190_p6) target bundleno = 1657 (0x679), region = 144  ;;  %v2761_v58 = vmul.f32 (!%p3190_p6), %v3191_v6, %v4741_v49  ;;  %v2769_v3 = vmul.f32 (!%p3190_p6), %v3191_v6, %v4743_v60  ;;  %v2762_v44 = vmul.f32 (!%p3190_p6), %v3191_v6, %v4737_v48  ;;  %v2770_v5 = vmul.f32 (!%p3190_p6), %v3191_v6, %v4739_v13 }
 0x586   : > { %v2763_v49 = vmul.f32 (!%p3190_p6), %v3191_v6, %v4749_v33  ;;  %v2771_v60 = vmul.f32 (!%p3190_p6), %v3191_v6, %v4751_v26  ;;  %v2764_v16 = vmul.f32 (!%p3190_p6), %v3191_v6, %v4745_v22  ;;  %v2772_v38 = vmul.f32 (!%p3190_p6), %v3191_v6, %v4747_v57 }
 0x587   : > { %3491 = vmatprep.mubr.msk.f32.mxu0 (!%p3190_p6), %vm2423_vm14, %v2761_v58  ;;  %3503 = vmatprep.mubr.msk.f32.mxu1 (!%p3190_p6), %vm2423_vm14, %v2769_v3  ;;  %v2765_v48 = vmul.f32 (!%p3190_p6), %v3191_v6, %v4757_v18  ;;  %v2773_v13 = vmul.f32 (!%p3190_p6), %v3191_v6, %v4759_v42  ;;  %v2766_v33 = vmul.f32 (!%p3190_p6), %v3191_v6, %v4753_v40 }
 0x588   : > { %v2774_v26 = vmul.f32 (!%p3190_p6), %v3191_v6, %v4755_v46  ;;  %v2767_v22 = vmul.f32 (!%p3190_p6), %v3191_v6, %v4765_v35  ;;  %v2775_v57 = vmul.f32 (!%p3190_p6), %v3191_v6, %v4767_v1  ;;  %v2768_v18 = vmul.f32 (!%p3190_p6), %v3191_v6, %v4761_v11  ;;  %v3192_v46 = vld [vmem:[#allocation14] ss:$0 sm:$0xff] (!%p3190_p6) }
 0x589   : > { %v2776_v40 = vmul.f32 (!%p3190_p6), %v3191_v6, %v4763_v4 }
 0x58a   : > { %v2777_v7 = vld [vmem:[%s5054_s0] sm:$0xff] (!%p3190_p6)  ;;  %v2778_v28 = vld [vmem:[%s5054_s0 + $0x8] sm:$0xff] (!%p3190_p6)  ;;  %v2779_v34 = vld [vmem:[%s5054_s0 + $0x10] sm:$0xff] (!%p3190_p6) }
 0x58b   : > { %v3556_v32 = vpack.c.bf16 (!%p3190_p6), %v2778_v28, %v2777_v7  ;;  %v2780_v10 = vld [vmem:[%s5054_s0 + $0x18] sm:$0xff] (!%p3190_p6) }
 0x58c   : > { %v3560_v43 = vpack.c.bf16 %v2780_v10, %v2779_v34 }
 0x58d   : > { %3557 = vmatprep.subr.bf16.mxu0 %v3556_v32  ;;  %3602 = vmatprep.subr.bf16.mxu1 %v3556_v32 }
 0x58e   : > { %3559 = vmatpush3.bf16.msra.mxu0 %v3556_v32  ;;  %3604 = vmatpush3.bf16.msra.mxu1 %v3556_v32 }
 0x58f   : > { %3561 = vmatprep.subr.bf16.mxu0 %v3560_v43  ;;  %3603 = vmatprep.subr.bf16.mxu1 %v3560_v43 }
 0x592   : > { %3563 = vmatpush3.bf16.msra.mxu0 %v3560_v43  ;;  %3605 = vmatpush3.bf16.msra.mxu1 %v3560_v43 }
 0x595   : > { %3492 = vmatmul.mubr.msk.f32.vlgmr.msra.gmra.mrb[0].mxu0 %vm2423_vm14, %v2762_v44  ;;  %3504 = vmatmul.mubr.msk.f32.vlgmr.msra.gmra.mrb[0].mxu1 %vm2423_vm14, %v2770_v5 }
 0x596   : > { %3494 = vmatprep.mubr.msk.f32.mxu0 %vm2423_vm14, %v2763_v49  ;;  %3506 = vmatprep.mubr.msk.f32.mxu1 %vm2423_vm14, %v2771_v60 }
 0x599   : > { %3495 = vmatmul.mubr.msk.f32.gmra.mrb[2].mxu0 %vm2423_vm14, %v2764_v16  ;;  %3507 = vmatmul.mubr.msk.f32.gmra.mrb[2].mxu1 %vm2423_vm14, %v2772_v38 }
 0x59a   : > { %3497 = vmatprep.mubr.msk.f32.mxu0 %vm2423_vm14, %v2765_v48  ;;  %3509 = vmatprep.mubr.msk.f32.mxu1 %vm2423_vm14, %v2773_v13 }
 0x59d   : > { %3498 = vmatmul.mubr.msk.f32.gmra.mrb[4].mxu0 %vm2423_vm14, %v2766_v33  ;;  %3510 = vmatmul.mubr.msk.f32.gmra.mrb[4].mxu1 %vm2423_vm14, %v2774_v26 }
 0x59e   : > { %3500 = vmatprep.mubr.msk.f32.mxu0 %vm2423_vm14, %v2767_v22  ;;  %3512 = vmatprep.mubr.msk.f32.mxu1 %vm2423_vm14, %v2775_v57 }
 0x5a1   : > { %3501 = vmatmul.mubr.msk.f32.gmra.mrb[6].mxu0 %vm2423_vm14, %v2768_v18  ;;  %3513 = vmatmul.mubr.msk.f32.gmra.mrb[6].mxu1 %vm2423_vm14, %v2776_v40 }
 0x668   : > { %v3493_v42 = vpop.f32.mrb[0].mxu0  ;;  %v3505_v35 = vpop.f32.mrb[0].mxu1 }
 0x669   : > { %v2908_v1 = vadd.f32 %v3493_v42, %v3192_v46  ;;  %v2948_v54 = vadd.f32 %v3505_v35, %v3192_v46  ;;  %v2902_v45 = vpop.f32.mrb[1].mxu0  ;;  %v2942_v11 = vpop.f32.mrb[1].mxu1 }
 0x66a   : > { %v2903_v4 = vadd.f32 %v3192_v46, %v2902_v45  ;;  %v2943_v61 = vadd.f32 %v3192_v46, %v2942_v11 }
 0x66b   : > { %2982 = vst.msk [vmem:[%s3885_s22 + $0x8] sm:$0xff] %vm2423_vm14, %v2908_v1  ;;  %2990 = vst.msk [vmem:[%s3885_s22 + $0x48] sm:$0xff] %vm2423_vm14, %v2948_v54 }
 0x66c   : > { %2981 = vst.msk [vmem:[%s3885_s22] sm:$0xff] %vm2423_vm14, %v2903_v4  ;;  %2989 = vst.msk [vmem:[%s3885_s22 + $0x40] sm:$0xff] %vm2423_vm14, %v2943_v61  ;;  %v3496_v17 = vpop.f32.mrb[2].mxu0  ;;  %v3508_v55 = vpop.f32.mrb[2].mxu1 }
 0x66d   : > { %v2918_v51 = vadd.f32 %v3496_v17, %v3192_v46  ;;  %v2958_v50 = vadd.f32 %v3508_v55, %v3192_v46  ;;  %v2912_v12 = vpop.f32.mrb[3].mxu0  ;;  %v2952_v19 = vpop.f32.mrb[3].mxu1 }
 0x66e   : > { %v2913_v8 = vadd.f32 %v3192_v46, %v2912_v12  ;;  %v2953_v20 = vadd.f32 %v3192_v46, %v2952_v19 }
 0x66f   : > { %2984 = vst.msk [vmem:[%s3885_s22 + $0x18] sm:$0xff] %vm2423_vm14, %v2918_v51  ;;  %2992 = vst.msk [vmem:[%s3885_s22 + $0x58] sm:$0xff] %vm2423_vm14, %v2958_v50 }
 0x670   : > { %2983 = vst.msk [vmem:[%s3885_s22 + $0x10] sm:$0xff] %vm2423_vm14, %v2913_v8  ;;  %2991 = vst.msk [vmem:[%s3885_s22 + $0x50] sm:$0xff] %vm2423_vm14, %v2953_v20  ;;  %v3499_v52 = vpop.f32.mrb[4].mxu0  ;;  %v3511_v21 = vpop.f32.mrb[4].mxu1 }
 0x671   : > { %v2928_v56 = vadd.f32 %v3499_v52, %v3192_v46  ;;  %v2968_v62 = vadd.f32 %v3511_v21, %v3192_v46  ;;  %v2922_v59 = vpop.f32.mrb[5].mxu0  ;;  %v2962_v47 = vpop.f32.mrb[5].mxu1 }
 0x672   : > { %v2923_v14 = vadd.f32 %v3192_v46, %v2922_v59  ;;  %v2963_v25 = vadd.f32 %v3192_v46, %v2962_v47 }
 0x673   : > { %2986 = vst.msk [vmem:[%s3885_s22 + $0x28] sm:$0xff] %vm2423_vm14, %v2928_v56  ;;  %2994 = vst.msk [vmem:[%s3885_s22 + $0x68] sm:$0xff] %vm2423_vm14, %v2968_v62 }
 0x674   : > { %2985 = vst.msk [vmem:[%s3885_s22 + $0x20] sm:$0xff] %vm2423_vm14, %v2923_v14  ;;  %2993 = vst.msk [vmem:[%s3885_s22 + $0x60] sm:$0xff] %vm2423_vm14, %v2963_v25  ;;  %v3502_v27 = vpop.f32.mrb[6].mxu0  ;;  %v3514_v36 = vpop.f32.mrb[6].mxu1 }
 0x675   : > { %v2938_v37 = vadd.f32 %v3502_v27, %v3192_v46  ;;  %v2978_v30 = vadd.f32 %v3514_v36, %v3192_v46  ;;  %v2932_v31 = vpop.f32.mrb[7].mxu0  ;;  %v2972_v39 = vpop.f32.mrb[7].mxu1 }
 0x676   : > { %v2933_v0 = vadd.f32 %v3192_v46, %v2932_v31  ;;  %v2973_v9 = vadd.f32 %v3192_v46, %v2972_v39 }
 0x677   : > { %2988 = vst.msk [vmem:[%s3885_s22 + $0x38] sm:$0xff] %vm2423_vm14, %v2938_v37  ;;  %2996 = vst.msk [vmem:[%s3885_s22 + $0x78] sm:$0xff] %vm2423_vm14, %v2978_v30 }
 0x678   : > { %2987 = vst.msk [vmem:[%s3885_s22 + $0x30] sm:$0xff] %vm2423_vm14, %v2933_v0  ;;  %2995 = vst.msk [vmem:[%s3885_s22 + $0x70] sm:$0xff] %vm2423_vm14, %v2973_v9 }
 0x679 PF: > { %s5055_s25 = sld [smem:[#allocation17_spill]]  ;;  %s5056_s2 = sld [smem:[#allocation15_spill]] }
 0x67a   : > { %s5058_s26 = sld [smem:[#allocation18_spill]]  ;;  %s5059_s27 = sld [smem:[#allocation19_spill]] }
 0x67f   : > { %s31_s3 = sadd.s32 1, %s5055_s25   ;;  %s5057_s25 = sld [smem:[#allocation16_spill]] }
 0x680   : > { %p28_p7 = scmp.ge.s32.totalorder %s31_s3, 18  }
 0x682   :  { %30 = sbr.rel (!%p28_p7) target bundleno = 11 (0xb), region = 180 }

</bundles_post_ra>
